<compile_context>
chip_gen: v7x
topology: tpu7x:2x2x1
jax: 0.10.0
libtpu: 0.0.40
codegen_flags: <defaults>
</compile_context>

<pallas_src>
import functools

import jax
import jax.numpy as jnp
from jax.experimental import pallas as pl
from jax.experimental.pallas import tpu as pltpu

EPS = 1e-5
VMEM_LIMIT_BYTES = 48 * 1024 * 1024   # headroom on v7x (64 MiB physical); fine on v5e/v6e
DEFAULT_TILE_ROWS = 256               # large row tiles sit near the HBM roofline plateau


# ----------------------------- helpers -----------------------------
def _round_up(n, m):
    return ((n + m - 1) // m) * m


def _choose_tile_rows(n_rows):
    # Biggest row tile up to DEFAULT_TILE_ROWS; keep sublane (8) alignment.
    return min(DEFAULT_TILE_ROWS, _round_up(n_rows, 8))


def _pad_rows(x2, tile_rows):
    n = x2.shape[0]
    n_pad = _round_up(n, tile_rows)
    if n_pad != n:
        x2 = jnp.pad(x2, ((0, n_pad - n), (0, 0)))
    return x2


def _layernorm_f32(x):
    d = x.shape[-1]
    mean = jnp.sum(x, axis=-1, keepdims=True) * (1.0 / d)
    c = x - mean
    var = jnp.sum(c * c, axis=-1, keepdims=True) * (1.0 / d)   # unbiased=False
    return c * jax.lax.rsqrt(var + EPS)


def _gelu_tanh(x):
    c = jnp.float32(0.7978845608028654)  # sqrt(2/pi)
    return 0.5 * x * (1.0 + jnp.tanh(c * (x + 0.044715 * x * x * x)))


def _compiler_params(semantics):
    return pltpu.CompilerParams(
        dimension_semantics=semantics,
        vmem_limit_bytes=VMEM_LIMIT_BYTES,
    )


# ----------------------------- kernels -----------------------------
def ln_matmul_kernel(x_ref, w_ref, b_ref, o_ref):
    # Fused LayerNorm (scale/shift pre-folded into w/b) + projection matmul.
    x = x_ref[...].astype(jnp.float32)
    norm = _layernorm_f32(x)
    y = jnp.dot(norm, w_ref[...], preferred_element_type=jnp.float32) + b_ref[...]
    o_ref[...] = y.astype(o_ref.dtype)


def attn_outproj_kernel(q_ref, k_ref, v_ref, res_ref, wo_ref, bo_ref, o_ref, acc_ref):
    # One (batch, head) step: causal softmax(Q K^T / sqrt(hd)) @ V, then this head's
    # slice of the output projection accumulated into the residual (H is a grid
    # reduction axis; output tile stays resident across it).
    h = pl.program_id(1)

    @pl.when(h == 0)
    def _():
        acc_ref[0] = res_ref[0].astype(jnp.float32) + bo_ref[...].astype(jnp.float32)

    q = q_ref[0, 0].astype(jnp.float32)   # (S, hd)
    k = k_ref[0, 0].astype(jnp.float32)   # (S, hd)
    v = v_ref[0, 0].astype(jnp.float32)   # (S, hd)
    s_len, hd = q.shape
    scores = jnp.dot(q, k.T, preferred_element_type=jnp.float32)
    scores = scores * (1.0 / jnp.sqrt(jnp.float32(hd)))
    row = jax.lax.broadcasted_iota(jnp.int32, (s_len, s_len), 0)
    col = jax.lax.broadcasted_iota(jnp.int32, (s_len, s_len), 1)
    scores = jnp.where(col > row, jnp.float32(-1e30), scores)   # causal mask
    m = jnp.max(scores, axis=-1, keepdims=True)
    p = jnp.exp(scores - m)
    attn = p / jnp.sum(p, axis=-1, keepdims=True)
    # TODO(synk): attention dropout omitted (inference/eval mode -> identity).
    ctx = jnp.dot(attn, v, preferred_element_type=jnp.float32)               # (S, hd)
    acc_ref[0] += jnp.dot(ctx, wo_ref[0].astype(jnp.float32),
                          preferred_element_type=jnp.float32)                 # (S, D)

    @pl.when(h == pl.num_programs(1) - 1)
    def _():
        o_ref[0] = acc_ref[0].astype(o_ref.dtype)


def ln_ffn_add_kernel(x_ref, w1_ref, b1_ref, w2_ref, b2_ref, o_ref):
    # Fused LayerNorm2 (scale/shift pre-folded into w1/b1) + FFN (Linear-GELU-Linear) + residual.
    x = x_ref[...].astype(jnp.float32)
    norm = _layernorm_f32(x)
    h = jnp.dot(norm, w1_ref[...], preferred_element_type=jnp.float32) + b1_ref[...]
    g = _gelu_tanh(h)
    y = jnp.dot(g, w2_ref[...], preferred_element_type=jnp.float32) + b2_ref[...]
    o_ref[...] = (y + x).astype(o_ref.dtype)


# ----------------------------- pallas_call wrappers -----------------------------
def fused_ln_matmul(x2, w, b, *, tile_rows):
    n_rows, d = x2.shape
    n = w.shape[1]
    return pl.pallas_call(
        ln_matmul_kernel,
        out_shape=jax.ShapeDtypeStruct((n_rows, n), x2.dtype),
        grid_spec=pltpu.PrefetchScalarGridSpec(
            num_scalar_prefetch=0,
            grid=(n_rows // tile_rows,),
            in_specs=[
                pl.BlockSpec((tile_rows, d), lambda i: (i, 0)),
                pl.BlockSpec((d, n), lambda i: (0, 0)),   # resident weight (constant block idx)
                pl.BlockSpec((1, n), lambda i: (0, 0)),   # resident bias
            ],
            out_specs=pl.BlockSpec((tile_rows, n), lambda i: (i, 0)),
        ),
        compiler_params=_compiler_params(("parallel",)),
    )(x2, w, b.reshape(1, n))


def fused_attention_outproj(q, k, v, x_res, w_o, b_o):
    # q, k, v: [B, H, S, hd]; x_res: [B, S, D]; w_o: [D, D]; b_o: [D]
    B, H, S, hd = q.shape
    D = H * hd
    qkv_spec = pl.BlockSpec((1, 1, S, hd), lambda b, h: (b, h, 0, 0))
    row_spec = pl.BlockSpec((1, S, D), lambda b, h: (b, 0, 0))
    return pl.pallas_call(
        attn_outproj_kernel,
        out_shape=jax.ShapeDtypeStruct((B, S, D), q.dtype),
        grid_spec=pltpu.PrefetchScalarGridSpec(
            num_scalar_prefetch=0,
            grid=(B, H),                                           # H = reduction axis (last)
            in_specs=[
                qkv_spec, qkv_spec, qkv_spec,
                row_spec,                                          # residual (resident across H)
                pl.BlockSpec((1, hd, D), lambda b, h: (h, 0, 0)),  # this head's W_o rows
                pl.BlockSpec((1, D), lambda b, h: (0, 0)),         # resident bias
            ],
            out_specs=row_spec,
            scratch_shapes=[pltpu.VMEM((1, S, D), jnp.float32)],
        ),
        compiler_params=_compiler_params(("parallel", "arbitrary")),
    )(q, k, v, x_res, w_o.reshape(H, hd, D), b_o.reshape(1, D))


def fused_ln_ffn_add(x2, w1, b1, w2, b2, *, tile_rows):
    n_rows, d = x2.shape
    h = w1.shape[1]
    return pl.pallas_call(
        ln_ffn_add_kernel,
        out_shape=jax.ShapeDtypeStruct((n_rows, d), x2.dtype),
        grid_spec=pltpu.PrefetchScalarGridSpec(
            num_scalar_prefetch=0,
            grid=(n_rows // tile_rows,),
            in_specs=[
                pl.BlockSpec((tile_rows, d), lambda i: (i, 0)),
                pl.BlockSpec((d, h), lambda i: (0, 0)),
                pl.BlockSpec((1, h), lambda i: (0, 0)),
                pl.BlockSpec((h, d), lambda i: (0, 0)),
                pl.BlockSpec((1, d), lambda i: (0, 0)),
            ],
            out_specs=pl.BlockSpec((tile_rows, d), lambda i: (i, 0)),
        ),
        compiler_params=_compiler_params(("parallel",)),
    )(x2, w1, b1.reshape(1, h), w2, b2.reshape(1, d))


# ----------------------------- TransformerBlock forward -----------------------------
@functools.partial(jax.jit, static_argnames=("n_heads", "tile_rows"))
def transformer_block(x, params, n_heads, tile_rows=None):
    """x: [B, S, D] float32. Returns [B, S, D]. Inference/eval mode (dropout = identity)."""
    B, S, D = x.shape
    H = n_heads
    hd = D // H
    n_rows = B * S
    if tile_rows is None:
        tile_rows = _choose_tile_rows(n_rows)

    x2 = x.reshape(n_rows, D)
    x2p = _pad_rows(x2, tile_rows)

    # Fold LN scale/shift into the consumer matmuls (one-time, wrapper-side):
    #   (scale*norm + shift) @ W + b  ==  norm @ (scale[:,None]*W) + (shift@W + b)
    hp = jax.lax.Precision.HIGHEST
    w_qkv = jnp.concatenate([params["w_q"], params["w_k"], params["w_v"]], axis=1)   # [D, 3D]
    w_qkv_f = params["ln1_scale"][:, None] * w_qkv
    b_qkv_f = jnp.dot(params["ln1_shift"], w_qkv, precision=hp)                      # qkv_bias=False
    w1_f = params["ln2_scale"][:, None] * params["w_ff1"]
    b1_f = jnp.dot(params["ln2_shift"], params["w_ff1"], precision=hp) + params["b_ff1"]

    # 1) fused LayerNorm1 + QKV projection
    qkv = fused_ln_matmul(x2p, w_qkv_f, b_qkv_f, tile_rows=tile_rows)[:n_rows]       # [BS, 3D]
    q, k, v = jnp.split(qkv, 3, axis=-1)

    def heads(t):
        return t.reshape(B, S, H, hd).transpose(0, 2, 1, 3)                          # [B, H, S, hd]

    # 2) fused per-(batch,head) causal attention + output projection + first residual
    #    (drop_shortcut = identity in eval mode)
    # TODO(synk): nn.Dropout(drop_rate) omitted — inference/eval semantics (identity).
    h1 = fused_attention_outproj(heads(q), heads(k), heads(v), x,
                                 params["w_o"], params["b_o"])                       # [B, S, D]

    # 3) fused LayerNorm2 + FFN (Linear-GELU-Linear) + second residual
    h1p = _pad_rows(h1.reshape(n_rows, D), tile_rows)
    out = fused_ln_ffn_add(h1p, w1_f, b1_f, params["w_ff2"], params["b_ff2"],
                           tile_rows=tile_rows)[:n_rows]
    return out.reshape(B, S, D)


# ----------------------------- pure-JAX reference -----------------------------
def reference_block(x, params, n_heads):
    def layer_norm(t, scale, shift):
        mean = jnp.mean(t, axis=-1, keepdims=True)
        var = jnp.mean((t - mean) ** 2, axis=-1, keepdims=True)
        return scale * ((t - mean) / jnp.sqrt(var + EPS)) + shift

    def gelu(t):
        return 0.5 * t * (1 + jnp.tanh(jnp.sqrt(2.0 / jnp.pi) * (t + 0.044715 * t ** 3)))

    B, S, D = x.shape
    H = n_heads
    hd = D // H
    shortcut = x
    h = layer_norm(x, params["ln1_scale"], params["ln1_shift"])
    q = h @ params["w_q"]
    k = h @ params["w_k"]
    v = h @ params["w_v"]

    def heads(t):
        return t.reshape(B, S, H, hd).transpose(0, 2, 1, 3)

    q, k, v = heads(q), heads(k), heads(v)
    scores = jnp.einsum("bhqd,bhkd->bhqk", q, k) / jnp.sqrt(jnp.float32(hd))
    mask = jnp.triu(jnp.ones((S, S), dtype=bool), k=1)
    scores = jnp.where(mask, -jnp.inf, scores)
    w = jax.nn.softmax(scores, axis=-1)
    ctx = jnp.einsum("bhqk,bhkd->bhqd", w, v).transpose(0, 2, 1, 3).reshape(B, S, D)
    ctx = ctx @ params["w_o"] + params["b_o"]
    x1 = ctx + shortcut
    shortcut = x1
    h2 = layer_norm(x1, params["ln2_scale"], params["ln2_shift"])
    f = gelu(h2 @ params["w_ff1"] + params["b_ff1"]) @ params["w_ff2"] + params["b_ff2"]
    return f + shortcut


# ----------------------------- demo / check -----------------------------
if __name__ == "__main__":
    key = jax.random.PRNGKey(0)
    # Small shapes consistent with the module; emb_dim chosen lane-dense (multiple of 128).
    B, S, D, H = 2, 16, 128, 4
    hidden = 4 * D
    ks = jax.random.split(key, 16)

    def w(k, shape, scale=0.08):
        return jax.random.normal(k, shape, dtype=jnp.float32) * scale

    x = jax.random.normal(ks[0], (B, S, D), dtype=jnp.float32)
    params = {
        "ln1_scale": 1.0 + 0.1 * jax.random.normal(ks[1], (D,), dtype=jnp.float32),
        "ln1_shift": 0.1 * jax.random.normal(ks[2], (D,), dtype=jnp.float32),
        "ln2_scale": 1.0 + 0.1 * jax.random.normal(ks[3], (D,), dtype=jnp.float32),
        "ln2_shift": 0.1 * jax.random.normal(ks[4], (D,), dtype=jnp.float32),
        "w_q": w(ks[5], (D, D)),
        "w_k": w(ks[6], (D, D)),
        "w_v": w(ks[7], (D, D)),
        "w_o": w(ks[8], (D, D)),
        "b_o": 0.05 * jax.random.normal(ks[9], (D,), dtype=jnp.float32),
        "w_ff1": w(ks[10], (D, hidden)),
        "b_ff1": 0.05 * jax.random.normal(ks[11], (hidden,), dtype=jnp.float32),
        "w_ff2": w(ks[12], (hidden, D)),
        "b_ff2": 0.05 * jax.random.normal(ks[13], (D,), dtype=jnp.float32),
    }

    out = transformer_block(x, params, n_heads=H)
    out = jax.block_until_ready(out)

    with jax.default_matmul_precision("highest"):
        ref = reference_block(x, params, H)

    assert out.shape == x.shape
    max_err = float(jnp.max(jnp.abs(out - ref)))
    assert jnp.allclose(out, ref, atol=2e-2, rtol=2e-2), f"max abs err {max_err}"
    print("KERNEL_OK")
</pallas_src>

<mosaic_0001>
module attributes {stable_mosaic.version = 11 : i64} {
  func.func @ln_matmul_kernel(%arg0: i32, %arg1: memref<32x128xf32, #tpu.memory_space<vmem>>, %arg2: memref<128x384xf32, #tpu.memory_space<vmem>>, %arg3: memref<1x384xf32, #tpu.memory_space<vmem>>, %arg4: memref<32x384xf32, #tpu.memory_space<vmem>>) attributes {dimension_semantics = [#tpu.dimension_semantics<parallel>], iteration_bounds = array<i64: 1>, scalar_prefetch = 0 : i64, scratch_operands = 0 : i64, tpu.core_type = #tpu.core_type<tc>, window_params = [{transform_indices = @transform_0, window_bounds = array<i64: 32, 128>}, {pipeline_mode = #tpu.pipeline_mode<synchronous>, transform_indices = @transform_1, window_bounds = array<i64: 128, 384>}, {pipeline_mode = #tpu.pipeline_mode<synchronous>, transform_indices = @transform_2, window_bounds = array<i64: 1, 384>}, {transform_indices = @transform_3, window_bounds = array<i64: 32, 384>}]} {
    %c0 = arith.constant 0 : index
    %c0_0 = arith.constant 0 : index
    %0 = vector.load %arg1[%c0, %c0_0] : memref<32x128xf32, #tpu.memory_space<vmem>>, vector<32x128xf32>
    %cst = arith.constant dense<0.000000e+00> : vector<32xf32>
    %1 = vector.multi_reduction <add>, %0, %cst [1] : vector<32x128xf32> to vector<32xf32>
    %2 = vector.shape_cast %1 : vector<32xf32> to vector<32x1xf32>
    %cst_1 = arith.constant 7.812500e-03 : f32
    %3 = vector.broadcast %cst_1 : f32 to vector<32x1xf32>
    %4 = arith.mulf %2, %3 : vector<32x1xf32>
    %5 = vector.broadcast %4 : vector<32x1xf32> to vector<32x128xf32>
    %6 = arith.subf %0, %5 : vector<32x128xf32>
    %7 = arith.mulf %6, %6 : vector<32x128xf32>
    %cst_2 = arith.constant dense<0.000000e+00> : vector<32xf32>
    %8 = vector.multi_reduction <add>, %7, %cst_2 [1] : vector<32x128xf32> to vector<32xf32>
    %9 = vector.shape_cast %8 : vector<32xf32> to vector<32x1xf32>
    %cst_3 = arith.constant 7.812500e-03 : f32
    %10 = vector.broadcast %cst_3 : f32 to vector<32x1xf32>
    %11 = arith.mulf %9, %10 : vector<32x1xf32>
    %cst_4 = arith.constant 9.99999974E-6 : f32
    %12 = vector.broadcast %cst_4 : f32 to vector<32x1xf32>
    %13 = arith.addf %11, %12 : vector<32x1xf32>
    %14 = math.rsqrt %13 : vector<32x1xf32>
    %15 = vector.broadcast %14 : vector<32x1xf32> to vector<32x128xf32>
    %16 = arith.mulf %6, %15 : vector<32x128xf32>
    %c0_5 = arith.constant 0 : index
    %c0_6 = arith.constant 0 : index
    %17 = vector.load %arg2[%c0_5, %c0_6] : memref<128x384xf32, #tpu.memory_space<vmem>>, vector<128x384xf32>
    %cst_7 = arith.constant dense<0.000000e+00> : vector<32x384xf32>
    %18 = tpu.matmul %16, %17, %cst_7 {dimension_numbers = #tpu.dot_dimension_numbers<[1], [0], [0], [1], [0, 0, 1, 1], [], []>} : vector<32x128xf32>, vector<128x384xf32>, vector<32x384xf32> -> vector<32x384xf32>
    %c0_8 = arith.constant 0 : index
    %c0_9 = arith.constant 0 : index
    %19 = vector.load %arg3[%c0_8, %c0_9] : memref<1x384xf32, #tpu.memory_space<vmem>>, vector<1x384xf32>
    %20 = vector.broadcast %19 : vector<1x384xf32> to vector<32x384xf32>
    %21 = arith.addf %18, %20 : vector<32x384xf32>
    %c0_10 = arith.constant 0 : index
    %c0_11 = arith.constant 0 : index
    %22 = vector.load %arg4[%c0_10, %c0_11] : memref<32x384xf32, #tpu.memory_space<vmem>>, vector<32x384xf32>
    tpu.vector_store %arg4[%c0_10, %c0_11], %21 {strides = array<i32>} : memref<32x384xf32, #tpu.memory_space<vmem>>, vector<32x384xf32>,
    return
  }
  func.func @transform_0(%arg0: i32) -> (i32, i32) {
    %c0_i32 = arith.constant 0 : i32
    %c0_i32_0 = arith.constant 0 : i32
    return %arg0, %c0_i32 : i32, i32
  }
  func.func @transform_1(%arg0: i32) -> (i32, i32) {
    %c0_i32 = arith.constant 0 : i32
    %c0_i32_0 = arith.constant 0 : i32
    %c0_i32_1 = arith.constant 0 : i32
    return %c0_i32, %c0_i32_0 : i32, i32
  }
  func.func @transform_2(%arg0: i32) -> (i32, i32) {
    %c0_i32 = arith.constant 0 : i32
    %c0_i32_0 = arith.constant 0 : i32
    %c0_i32_1 = arith.constant 0 : i32
    return %c0_i32, %c0_i32_0 : i32, i32
  }
  func.func @transform_3(%arg0: i32) -> (i32, i32) {
    %c0_i32 = arith.constant 0 : i32
    %c0_i32_0 = arith.constant 0 : i32
    return %arg0, %c0_i32 : i32, i32
  }
}

module attributes {stable_mosaic.version = 11 : i64} {
  func.func @attn_outproj_kernel(%arg0: i32, %arg1: i32, %arg2: memref<1x1x16x32xf32, #tpu.memory_space<vmem>>, %arg3: memref<1x1x16x32xf32, #tpu.memory_space<vmem>>, %arg4: memref<1x1x16x32xf32, #tpu.memory_space<vmem>>, %arg5: memref<1x16x128xf32, #tpu.memory_space<vmem>>, %arg6: memref<1x32x128xf32, #tpu.memory_space<vmem>>, %arg7: memref<1x128xf32, #tpu.memory_space<vmem>>, %arg8: memref<1x16x128xf32, #tpu.memory_space<vmem>>, %arg9: memref<1x16x128xf32, #tpu.memory_space<vmem>>) attributes {dimension_semantics = [#tpu.dimension_semantics<parallel>, #tpu.dimension_semantics<arbitrary>], iteration_bounds = array<i64: 2, 4>, scalar_prefetch = 0 : i64, scratch_operands = 1 : i64, tpu.core_type = #tpu.core_type<tc>, window_params = [{transform_indices = @transform_0, window_bounds = array<i64: 1, 1, 16, 32>}, {transform_indices = @transform_1, window_bounds = array<i64: 1, 1, 16, 32>}, {transform_indices = @transform_2, window_bounds = array<i64: 1, 1, 16, 32>}, {transform_indices = @transform_3, window_bounds = array<i64: 1, 16, 128>}, {transform_indices = @transform_4, window_bounds = array<i64: 1, 32, 128>}, {pipeline_mode = #tpu.pipeline_mode<synchronous>, transform_indices = @transform_5, window_bounds = array<i64: 1, 128>}, {transform_indices = @transform_6, window_bounds = array<i64: 1, 16, 128>}]} {
    %c0_i32 = arith.constant 0 : i32
    %0 = arith.cmpi eq, %arg1, %c0_i32 : i32
    %1 = arith.extui %0 : i1 to i32
    %c0_i32_0 = arith.constant 0 : i32
    %2 = arith.cmpi ne, %1, %c0_i32_0 : i32
    scf.if %2 {
      %c0_29 = arith.constant 0 : index
      %c0_30 = arith.constant 0 : index
      %c0_31 = arith.constant 0 : index
      %42 = vector.load %arg5[%c0_29, %c0_30, %c0_31] : memref<1x16x128xf32, #tpu.memory_space<vmem>>, vector<1x16x128xf32>
      %43 = vector.shape_cast %42 : vector<1x16x128xf32> to vector<16x128xf32>
      %c0_32 = arith.constant 0 : index
      %c0_33 = arith.constant 0 : index
      %44 = vector.load %arg7[%c0_32, %c0_33] : memref<1x128xf32, #tpu.memory_space<vmem>>, vector<1x128xf32>
      %45 = vector.broadcast %44 : vector<1x128xf32> to vector<16x128xf32>
      %46 = arith.addf %43, %45 : vector<16x128xf32>
      %c0_34 = arith.constant 0 : index
      %c0_35 = arith.constant 0 : index
      %c0_36 = arith.constant 0 : index
      %47 = vector.load %arg9[%c0_34, %c0_35, %c0_36] : memref<1x16x128xf32, #tpu.memory_space<vmem>>, vector<1x16x128xf32>
      %48 = vector.shape_cast %47 : vector<1x16x128xf32> to vector<16x128xf32>
      %49 = vector.shape_cast %46 : vector<16x128xf32> to vector<1x16x128xf32>
      tpu.vector_store %arg9[%c0_34, %c0_35, %c0_36], %49 {strides = array<i32>} : memref<1x16x128xf32, #tpu.memory_space<vmem>>, vector<1x16x128xf32>,
    } else {
    }
    %c0 = arith.constant 0 : index
    %c0_1 = arith.constant 0 : index
    %c0_2 = arith.constant 0 : index
    %c0_3 = arith.constant 0 : index
    %3 = vector.load %arg2[%c0, %c0_1, %c0_2, %c0_3] : memref<1x1x16x32xf32, #tpu.memory_space<vmem>>, vector<1x1x16x32xf32>
    %4 = vector.shape_cast %3 : vector<1x1x16x32xf32> to vector<16x32xf32>
    %c0_4 = arith.constant 0 : index
    %c0_5 = arith.constant 0 : index
    %c0_6 = arith.constant 0 : index
    %c0_7 = arith.constant 0 : index
    %5 = vector.load %arg3[%c0_4, %c0_5, %c0_6, %c0_7] : memref<1x1x16x32xf32, #tpu.memory_space<vmem>>, vector<1x1x16x32xf32>
    %6 = vector.shape_cast %5 : vector<1x1x16x32xf32> to vector<16x32xf32>
    %c0_8 = arith.constant 0 : index
    %c0_9 = arith.constant 0 : index
    %c0_10 = arith.constant 0 : index
    %c0_11 = arith.constant 0 : index
    %7 = vector.load %arg4[%c0_8, %c0_9, %c0_10, %c0_11] : memref<1x1x16x32xf32, #tpu.memory_space<vmem>>, vector<1x1x16x32xf32>
    %8 = vector.shape_cast %7 : vector<1x1x16x32xf32> to vector<16x32xf32>
    %9 = tpu.transpose %6, [1, 0] : vector<16x32xf32> -> vector<32x16xf32>
    %cst = arith.constant dense<0.000000e+00> : vector<16x16xf32>
    %10 = tpu.matmul %4, %9, %cst {dimension_numbers = #tpu.dot_dimension_numbers<[1], [0], [0], [1], [0, 0, 1, 1], [], []>} : vector<16x32xf32>, vector<32x16xf32>, vector<16x16xf32> -> vector<16x16xf32>
    %cst_12 = arith.constant 3.200000e+01 : f32
    %11 = math.sqrt %cst_12 : f32
    %cst_13 = arith.constant 1.000000e+00 : f32
    %12 = arith.divf %cst_13, %11 : f32
    %13 = vector.broadcast %12 : f32 to vector<16x16xf32>
    %14 = arith.mulf %10, %13 : vector<16x16xf32>
    %15 = tpu.iota {dimensions = array<i32: 0>} : vector<16x16xi32>
    %16 = tpu.iota {dimensions = array<i32: 1>} : vector<16x16xi32>
    %17 = arith.cmpi sgt, %16, %15 : vector<16x16xi32>
    %cst_14 = arith.constant -1.000000e+30 : f32
    %18 = vector.broadcast %cst_14 : f32 to vector<16x16xf32>
    %19 = arith.select %17, %18, %14 : vector<16x16xi1>, vector<16x16xf32>
    %cst_15 = arith.constant dense<0xFF800000> : vector<16xf32>
    %20 = vector.multi_reduction <maximumf>, %19, %cst_15 [1] : vector<16x16xf32> to vector<16xf32>
    %21 = vector.shape_cast %20 : vector<16xf32> to vector<16x1xf32>
    %22 = vector.broadcast %21 : vector<16x1xf32> to vector<16x16xf32>
    %23 = arith.subf %19, %22 : vector<16x16xf32>
    %24 = math.exp %23 : vector<16x16xf32>
    %cst_16 = arith.constant dense<0.000000e+00> : vector<16xf32>
    %25 = vector.multi_reduction <add>, %24, %cst_16 [1] : vector<16x16xf32> to vector<16xf32>
    %26 = vector.shape_cast %25 : vector<16xf32> to vector<16x1xf32>
    %27 = vector.broadcast %26 : vector<16x1xf32> to vector<16x16xf32>
    %28 = arith.divf %24, %27 : vector<16x16xf32>
    %cst_17 = arith.constant dense<0.000000e+00> : vector<16x32xf32>
    %29 = tpu.matmul %28, %8, %cst_17 {dimension_numbers = #tpu.dot_dimension_numbers<[1], [0], [0], [1], [0, 0, 1, 1], [], []>} : vector<16x16xf32>, vector<16x32xf32>, vector<16x32xf32> -> vector<16x32xf32>
    %c0_18 = arith.constant 0 : index
    %c0_19 = arith.constant 0 : index
    %c0_20 = arith.constant 0 : index
    %30 = vector.load %arg9[%c0_18, %c0_19, %c0_20] : memref<1x16x128xf32, #tpu.memory_space<vmem>>, vector<1x16x128xf32>
    %31 = vector.shape_cast %30 : vector<1x16x128xf32> to vector<16x128xf32>
    %c0_21 = arith.constant 0 : index
    %c0_22 = arith.constant 0 : index
    %c0_23 = arith.constant 0 : index
    %32 = vector.load %arg6[%c0_21, %c0_22, %c0_23] : memref<1x32x128xf32, #tpu.memory_space<vmem>>, vector<1x32x128xf32>
    %33 = vector.shape_cast %32 : vector<1x32x128xf32> to vector<32x128xf32>
    %cst_24 = arith.constant dense<0.000000e+00> : vector<16x128xf32>
    %34 = tpu.matmul %29, %33, %cst_24 {dimension_numbers = #tpu.dot_dimension_numbers<[1], [0], [0], [1], [0, 0, 1, 1], [], []>} : vector<16x32xf32>, vector<32x128xf32>, vector<16x128xf32> -> vector<16x128xf32>
    %35 = arith.addf %31, %34 : vector<16x128xf32>
    %c0_25 = arith.constant 0 : index
    %c0_26 = arith.constant 0 : index
    %c0_27 = arith.constant 0 : index
    %36 = vector.load %arg9[%c0_25, %c0_26, %c0_27] : memref<1x16x128xf32, #tpu.memory_space<vmem>>, vector<1x16x128xf32>
    %37 = vector.shape_cast %36 : vector<1x16x128xf32> to vector<16x128xf32>
    %38 = vector.shape_cast %35 : vector<16x128xf32> to vector<1x16x128xf32>
    tpu.vector_store %arg9[%c0_25, %c0_26, %c0_27], %38 {strides = array<i32>} : memref<1x16x128xf32, #tpu.memory_space<vmem>>, vector<1x16x128xf32>,
    %c3_i32 = arith.constant 3 : i32
    %39 = arith.cmpi eq, %arg1, %c3_i32 : i32
    %40 = arith.extui %39 : i1 to i32
    %c0_i32_28 = arith.constant 0 : i32
    %41 = arith.cmpi ne, %40, %c0_i32_28 : i32
    scf.if %41 {
      %c0_29 = arith.constant 0 : index
      %c0_30 = arith.constant 0 : index
      %c0_31 = arith.constant 0 : index
      %42 = vector.load %arg9[%c0_29, %c0_30, %c0_31] : memref<1x16x128xf32, #tpu.memory_space<vmem>>, vector<1x16x128xf32>
      %43 = vector.shape_cast %42 : vector<1x16x128xf32> to vector<16x128xf32>
      %c0_32 = arith.constant 0 : index
      %c0_33 = arith.constant 0 : index
      %c0_34 = arith.constant 0 : index
      %44 = vector.load %arg8[%c0_32, %c0_33, %c0_34] : memref<1x16x128xf32, #tpu.memory_space<vmem>>, vector<1x16x128xf32>
      %45 = vector.shape_cast %44 : vector<1x16x128xf32> to vector<16x128xf32>
      %46 = vector.shape_cast %43 : vector<16x128xf32> to vector<1x16x128xf32>
      tpu.vector_store %arg8[%c0_32, %c0_33, %c0_34], %46 {strides = array<i32>} : memref<1x16x128xf32, #tpu.memory_space<vmem>>, vector<1x16x128xf32>,
    } else {
    }
    return
  }
  func.func @transform_0(%arg0: i32, %arg1: i32) -> (i32, i32, i32, i32) {
    %c0_i32 = arith.constant 0 : i32
    %c0_i32_0 = arith.constant 0 : i32
    %c0_i32_1 = arith.constant 0 : i32
    return %arg0, %arg1, %c0_i32, %c0_i32_0 : i32, i32, i32, i32
  }
  func.func @transform_1(%arg0: i32, %arg1: i32) -> (i32, i32, i32, i32) {
    %c0_i32 = arith.constant 0 : i32
    %c0_i32_0 = arith.constant 0 : i32
    %c0_i32_1 = arith.constant 0 : i32
    return %arg0, %arg1, %c0_i32, %c0_i32_0 : i32, i32, i32, i32
  }
  func.func @transform_2(%arg0: i32, %arg1: i32) -> (i32, i32, i32, i32) {
    %c0_i32 = arith.constant 0 : i32
    %c0_i32_0 = arith.constant 0 : i32
    %c0_i32_1 = arith.constant 0 : i32
    return %arg0, %arg1, %c0_i32, %c0_i32_0 : i32, i32, i32, i32
  }
  func.func @transform_3(%arg0: i32, %arg1: i32) -> (i32, i32, i32) {
    %c0_i32 = arith.constant 0 : i32
    %c0_i32_0 = arith.constant 0 : i32
    %c0_i32_1 = arith.constant 0 : i32
    return %arg0, %c0_i32, %c0_i32_0 : i32, i32, i32
  }
  func.func @transform_4(%arg0: i32, %arg1: i32) -> (i32, i32, i32) {
    %c0_i32 = arith.constant 0 : i32
    %c0_i32_0 = arith.constant 0 : i32
    %c0_i32_1 = arith.constant 0 : i32
    return %arg1, %c0_i32, %c0_i32_0 : i32, i32, i32
  }
  func.func @transform_5(%arg0: i32, %arg1: i32) -> (i32, i32) {
    %c0_i32 = arith.constant 0 : i32
    %c0_i32_0 = arith.constant 0 : i32
    %c0_i32_1 = arith.constant 0 : i32
    return %c0_i32, %c0_i32_0 : i32, i32
  }
  func.func @transform_6(%arg0: i32, %arg1: i32) -> (i32, i32, i32) {
    %c0_i32 = arith.constant 0 : i32
    %c0_i32_0 = arith.constant 0 : i32
    %c0_i32_1 = arith.constant 0 : i32
    return %arg0, %c0_i32, %c0_i32_0 : i32, i32, i32
  }
}

module attributes {stable_mosaic.version = 11 : i64} {
  func.func @ln_ffn_add_kernel(%arg0: i32, %arg1: memref<32x128xf32, #tpu.memory_space<vmem>>, %arg2: memref<128x512xf32, #tpu.memory_space<vmem>>, %arg3: memref<1x512xf32, #tpu.memory_space<vmem>>, %arg4: memref<512x128xf32, #tpu.memory_space<vmem>>, %arg5: memref<1x128xf32, #tpu.memory_space<vmem>>, %arg6: memref<32x128xf32, #tpu.memory_space<vmem>>) attributes {dimension_semantics = [#tpu.dimension_semantics<parallel>], iteration_bounds = array<i64: 1>, scalar_prefetch = 0 : i64, scratch_operands = 0 : i64, tpu.core_type = #tpu.core_type<tc>, window_params = [{transform_indices = @transform_0, window_bounds = array<i64: 32, 128>}, {pipeline_mode = #tpu.pipeline_mode<synchronous>, transform_indices = @transform_1, window_bounds = array<i64: 128, 512>}, {pipeline_mode = #tpu.pipeline_mode<synchronous>, transform_indices = @transform_2, window_bounds = array<i64: 1, 512>}, {pipeline_mode = #tpu.pipeline_mode<synchronous>, transform_indices = @transform_3, window_bounds = array<i64: 512, 128>}, {pipeline_mode = #tpu.pipeline_mode<synchronous>, transform_indices = @transform_4, window_bounds = array<i64: 1, 128>}, {transform_indices = @transform_5, window_bounds = array<i64: 32, 128>}]} {
    %c0 = arith.constant 0 : index
    %c0_0 = arith.constant 0 : index
    %0 = vector.load %arg1[%c0, %c0_0] : memref<32x128xf32, #tpu.memory_space<vmem>>, vector<32x128xf32>
    %cst = arith.constant dense<0.000000e+00> : vector<32xf32>
    %1 = vector.multi_reduction <add>, %0, %cst [1] : vector<32x128xf32> to vector<32xf32>
    %2 = vector.shape_cast %1 : vector<32xf32> to vector<32x1xf32>
    %cst_1 = arith.constant 7.812500e-03 : f32
    %3 = vector.broadcast %cst_1 : f32 to vector<32x1xf32>
    %4 = arith.mulf %2, %3 : vector<32x1xf32>
    %5 = vector.broadcast %4 : vector<32x1xf32> to vector<32x128xf32>
    %6 = arith.subf %0, %5 : vector<32x128xf32>
    %7 = arith.mulf %6, %6 : vector<32x128xf32>
    %cst_2 = arith.constant dense<0.000000e+00> : vector<32xf32>
    %8 = vector.multi_reduction <add>, %7, %cst_2 [1] : vector<32x128xf32> to vector<32xf32>
    %9 = vector.shape_cast %8 : vector<32xf32> to vector<32x1xf32>
    %cst_3 = arith.constant 7.812500e-03 : f32
    %10 = vector.broadcast %cst_3 : f32 to vector<32x1xf32>
    %11 = arith.mulf %9, %10 : vector<32x1xf32>
    %cst_4 = arith.constant 9.99999974E-6 : f32
    %12 = vector.broadcast %cst_4 : f32 to vector<32x1xf32>
    %13 = arith.addf %11, %12 : vector<32x1xf32>
    %14 = math.rsqrt %13 : vector<32x1xf32>
    %15 = vector.broadcast %14 : vector<32x1xf32> to vector<32x128xf32>
    %16 = arith.mulf %6, %15 : vector<32x128xf32>
    %c0_5 = arith.constant 0 : index
    %c0_6 = arith.constant 0 : index
    %17 = vector.load %arg2[%c0_5, %c0_6] : memref<128x512xf32, #tpu.memory_space<vmem>>, vector<128x512xf32>
    %cst_7 = arith.constant dense<0.000000e+00> : vector<32x512xf32>
    %18 = tpu.matmul %16, %17, %cst_7 {dimension_numbers = #tpu.dot_dimension_numbers<[1], [0], [0], [1], [0, 0, 1, 1], [], []>} : vector<32x128xf32>, vector<128x512xf32>, vector<32x512xf32> -> vector<32x512xf32>
    %c0_8 = arith.constant 0 : index
    %c0_9 = arith.constant 0 : index
    %19 = vector.load %arg3[%c0_8, %c0_9] : memref<1x512xf32, #tpu.memory_space<vmem>>, vector<1x512xf32>
    %20 = vector.broadcast %19 : vector<1x512xf32> to vector<32x512xf32>
    %21 = arith.addf %18, %20 : vector<32x512xf32>
    %cst_10 = arith.constant 5.000000e-01 : f32
    %22 = vector.broadcast %cst_10 : f32 to vector<32x512xf32>
    %23 = arith.mulf %22, %21 : vector<32x512xf32>
    %cst_11 = arith.constant 4.471500e-02 : f32
    %24 = vector.broadcast %cst_11 : f32 to vector<32x512xf32>
    %25 = arith.mulf %24, %21 : vector<32x512xf32>
    %26 = arith.mulf %25, %21 : vector<32x512xf32>
    %27 = arith.mulf %26, %21 : vector<32x512xf32>
    %28 = arith.addf %21, %27 : vector<32x512xf32>
    %cst_12 = arith.constant 0.797884583 : f32
    %29 = vector.broadcast %cst_12 : f32 to vector<32x512xf32>
    %30 = arith.mulf %29, %28 : vector<32x512xf32>
    %31 = math.tanh %30 : vector<32x512xf32>
    %cst_13 = arith.constant 1.000000e+00 : f32
    %32 = vector.broadcast %cst_13 : f32 to vector<32x512xf32>
    %33 = arith.addf %32, %31 : vector<32x512xf32>
    %34 = arith.mulf %23, %33 : vector<32x512xf32>
    %c0_14 = arith.constant 0 : index
    %c0_15 = arith.constant 0 : index
    %35 = vector.load %arg4[%c0_14, %c0_15] : memref<512x128xf32, #tpu.memory_space<vmem>>, vector<512x128xf32>
    %cst_16 = arith.constant dense<0.000000e+00> : vector<32x128xf32>
    %36 = tpu.matmul %34, %35, %cst_16 {dimension_numbers = #tpu.dot_dimension_numbers<[1], [0], [0], [1], [0, 0, 1, 1], [], []>} : vector<32x512xf32>, vector<512x128xf32>, vector<32x128xf32> -> vector<32x128xf32>
    %c0_17 = arith.constant 0 : index
    %c0_18 = arith.constant 0 : index
    %37 = vector.load %arg5[%c0_17, %c0_18] : memref<1x128xf32, #tpu.memory_space<vmem>>, vector<1x128xf32>
    %38 = vector.broadcast %37 : vector<1x128xf32> to vector<32x128xf32>
    %39 = arith.addf %36, %38 : vector<32x128xf32>
    %40 = arith.addf %39, %0 : vector<32x128xf32>
    %c0_19 = arith.constant 0 : index
    %c0_20 = arith.constant 0 : index
    %41 = vector.load %arg6[%c0_19, %c0_20] : memref<32x128xf32, #tpu.memory_space<vmem>>, vector<32x128xf32>
    tpu.vector_store %arg6[%c0_19, %c0_20], %40 {strides = array<i32>} : memref<32x128xf32, #tpu.memory_space<vmem>>, vector<32x128xf32>,
    return
  }
  func.func @transform_0(%arg0: i32) -> (i32, i32) {
    %c0_i32 = arith.constant 0 : i32
    %c0_i32_0 = arith.constant 0 : i32
    return %arg0, %c0_i32 : i32, i32
  }
  func.func @transform_1(%arg0: i32) -> (i32, i32) {
    %c0_i32 = arith.constant 0 : i32
    %c0_i32_0 = arith.constant 0 : i32
    %c0_i32_1 = arith.constant 0 : i32
    return %c0_i32, %c0_i32_0 : i32, i32
  }
  func.func @transform_2(%arg0: i32) -> (i32, i32) {
    %c0_i32 = arith.constant 0 : i32
    %c0_i32_0 = arith.constant 0 : i32
    %c0_i32_1 = arith.constant 0 : i32
    return %c0_i32, %c0_i32_0 : i32, i32
  }
  func.func @transform_3(%arg0: i32) -> (i32, i32) {
    %c0_i32 = arith.constant 0 : i32
    %c0_i32_0 = arith.constant 0 : i32
    %c0_i32_1 = arith.constant 0 : i32
    return %c0_i32, %c0_i32_0 : i32, i32
  }
  func.func @transform_4(%arg0: i32) -> (i32, i32) {
    %c0_i32 = arith.constant 0 : i32
    %c0_i32_0 = arith.constant 0 : i32
    %c0_i32_1 = arith.constant 0 : i32
    return %c0_i32, %c0_i32_0 : i32, i32
  }
  func.func @transform_5(%arg0: i32) -> (i32, i32) {
    %c0_i32 = arith.constant 0 : i32
    %c0_i32_0 = arith.constant 0 : i32
    return %arg0, %c0_i32 : i32, i32
  }
}

</mosaic_0001>

<bundles_post_ra>
// kernel: transformer_block.3
= control target key start
LH: loop header
LB: loop body
LE: loop exit
PB: predicated region body
PF: predicated region fallthrough
CT: control target
= control target key end

     0   :  { %s692_s0 = inlined_call_operand.vmem [shape: f32[32,128], index: 0, kind: input, shape index: {}]   ;;  %s693_s1 = inlined_call_operand.vmem [shape: f32[128,384], index: 1, kind: input, shape index: {}]   ;;  %s694_s2 = inlined_call_operand.vmem [shape: f32[1,384], index: 2, kind: input, shape index: {}]   ;;  %s695_s3 = inlined_call_operand.vmem [shape: f32[32,384], index: 3, kind: output, shape index: {}]  }
   0x1   :  { %v14_v0 = vld [vmem:[%s692_s0] sm:$0xff]  ;;  %v16_v1 = vld [vmem:[%s692_s0 + $0x10] sm:$0xff]  ;;  %v478_v2 = vld [vmem:[%s692_s0 + $0x8] sm:$0xff] }
   0x2   :  { %18 = vadd.xlane.f32.xlu0 %v14_v0  ;;  %22 = vadd.xlane.f32.xlu1 %v16_v1  ;;  %v483_v3 = vld [vmem:[%s692_s0 + $0x18] sm:$0xff]  ;;  %v63_v4 = vld [vmem:[%s693_s1 + $0x8] sm:$0xff]  ;;  %v66_v5 = vld [vmem:[%s693_s1 + $0x20] sm:$0xff] }
   0x3   :  { %v62_v6 = vld [vmem:[%s693_s1] sm:$0xff]  ;;  %v375_v7 = vpack.c.bf16 %v66_v5, %v63_v4  ;;  %v65_v8 = vld [vmem:[%s693_s1 + $0x18] sm:$0xff]  ;;  %v72_v10 = vld [vmem:[%s693_s1 + $0x50] sm:$0xff] }
   0x4   :  { %v69_v9 = vld [vmem:[%s693_s1 + $0x38] sm:$0xff]  ;;  %v377_v11 = vpack.c.bf16 %v65_v8, %v62_v6  ;;  %v64_v13 = vld [vmem:[%s693_s1 + $0x10] sm:$0xff]  ;;  %v67_v14 = vld [vmem:[%s693_s1 + $0x28] sm:$0xff] }
   0x5   :  { %v379_v12 = vpack.c.bf16 %v72_v10, %v69_v9  ;;  %v68_v15 = vld [vmem:[%s693_s1 + $0x30] sm:$0xff]  ;;  %376 = vmatprep.subr.bf16.mxu0 %v375_v7  ;;  %v407_v16 = vpack.c.bf16 %v67_v14, %v64_v13  ;;  %v71_v17 = vld [vmem:[%s693_s1 + $0x48] sm:$0xff]  ;;  %v78_v19 = vld [vmem:[%s693_s1 + $0x80] sm:$0xff] }
   0x6   :  { %20 = vadd.xlane.f32.xlu0 %v478_v2  ;;  %24 = vadd.xlane.f32.xlu1 %v483_v3  ;;  %v75_v18 = vld [vmem:[%s693_s1 + $0x68] sm:$0xff]  ;;  %v381_v20 = vpack.c.bf16 %v71_v17, %v68_v15  ;;  %v70_v21 = vld [vmem:[%s693_s1 + $0x40] sm:$0xff]  ;;  %v73_v22 = vld [vmem:[%s693_s1 + $0x58] sm:$0xff] }
   0x7   :  { %378 = vmatpush1.bf16.msra.mxu0 %v377_v11  ;;  %408 = vmatprep.subr.bf16.mxu1 %v407_v16  ;;  %v383_v23 = vpack.c.bf16 %v78_v19, %v75_v18  ;;  %v411_v24 = vpack.c.bf16 %v73_v22, %v70_v21  ;;  %v74_v25 = vld [vmem:[%s693_s1 + $0x60] sm:$0xff]  ;;  %v77_v26 = vld [vmem:[%s693_s1 + $0x78] sm:$0xff]  ;;  %v84_v28 = vld [vmem:[%s693_s1 + $0xb0] sm:$0xff] }
   0x8   :  { %380 = vmatprep.subr.bf16.mxu0 %v379_v12  ;;  %v81_v27 = vld [vmem:[%s693_s1 + $0x98] sm:$0xff]  ;;  %410 = vmatpush3.bf16.msra.mxu1 %v407_v16  ;;  %v76_v29 = vld [vmem:[%s693_s1 + $0x70] sm:$0xff]  ;;  %v79_v30 = vld [vmem:[%s693_s1 + $0x88] sm:$0xff]  ;;  %v385_v32 = vpack.c.bf16 %v77_v26, %v74_v25  ;;  %v448_v25 = vmov 0.0  }
   0x9   :  { %412 = vmatprep.subr.bf16.mxu1 %v411_v24  ;;  %v415_v31 = vpack.c.bf16 %v79_v30, %v76_v29  ;;  %v387_v33 = vpack.c.bf16 %v84_v28, %v81_v27  ;;  %v80_v34 = vld [vmem:[%s693_s1 + $0x90] sm:$0xff]  ;;  %v83_v35 = vld [vmem:[%s693_s1 + $0xa8] sm:$0xff]  ;;  %v90_v54 = vld [vmem:[%s693_s1 + $0xe0] sm:$0xff]  ;;  %191 = vmatprep.mubr.f32.mxu0 %v448_v25 }
   0xa   :  { %v389_v36 = vpack.c.bf16 %v83_v35, %v80_v34  ;;  %v87_v53 = vld [vmem:[%s693_s1 + $0xc8] sm:$0xff]  ;;  %v82_v55 = vld [vmem:[%s693_s1 + $0xa0] sm:$0xff]  ;;  %v85_v57 = vld [vmem:[%s693_s1 + $0xb8] sm:$0xff] }
   0xb   :  { %382 = vmatpush1.bf16.msra.mxu0 %v381_v20  ;;  %v391_v56 = vpack.c.bf16 %v90_v54, %v87_v53  ;;  %v86_v58 = vld [vmem:[%s693_s1 + $0xc0] sm:$0xff]  ;;  %v89_v59 = vld [vmem:[%s693_s1 + $0xd8] sm:$0xff]  ;;  %v419_v60 = vpack.c.bf16 %v85_v57, %v82_v55  ;;  %v96_v63 = vld [vmem:[%s693_s1 + $0x110] sm:$0xff] }
   0xc   :  { %384 = vmatprep.subr.bf16.mxu0 %v383_v23  ;;  %414 = vmatpush3.bf16.msra.mxu1 %v411_v24  ;;  %v393_v61 = vpack.c.bf16 %v89_v59, %v86_v58  ;;  %v93_v62 = vld [vmem:[%s693_s1 + $0xf8] sm:$0xff]  ;;  %v95_v4 = vld [vmem:[%s693_s1 + $0x108] sm:$0xff]  ;;  %v102_v8 = vld [vmem:[%s693_s1 + $0x140] sm:$0xff] }
   0xd   :  { %416 = vmatprep.subr.bf16.mxu1 %v415_v31  ;;  %v99_v7 = vld [vmem:[%s693_s1 + $0x128] sm:$0xff]  ;;  %v94_v9 = vld [vmem:[%s693_s1 + $0x100] sm:$0xff]  ;;  %v97_v11 = vld [vmem:[%s693_s1 + $0x118] sm:$0xff] }
   0xe   :  { %v399_v10 = vpack.c.bf16 %v102_v8, %v99_v7  ;;  %v98_v12 = vld [vmem:[%s693_s1 + $0x120] sm:$0xff]  ;;  %v101_v13 = vld [vmem:[%s693_s1 + $0x138] sm:$0xff]  ;;  %v427_v14 = vpack.c.bf16 %v97_v11, %v94_v9  ;;  %v108_v17 = vld [vmem:[%s693_s1 + $0x170] sm:$0xff] }
   0xf   :  { %386 = vmatpush1.bf16.msra.mxu0 %v385_v32  ;;  %v401_v15 = vpack.c.bf16 %v101_v13, %v98_v12  ;;  %v105_v16 = vld [vmem:[%s693_s1 + $0x158] sm:$0xff]  ;;  %v100_v18 = vld [vmem:[%s693_s1 + $0x130] sm:$0xff]  ;;  %v103_v20 = vld [vmem:[%s693_s1 + $0x148] sm:$0xff] }
  0x10   :  { %388 = vmatprep.subr.bf16.mxu0 %v387_v33  ;;  %418 = vmatpush3.bf16.msra.mxu1 %v415_v31  ;;  %v403_v19 = vpack.c.bf16 %v108_v17, %v105_v16  ;;  %v104_v21 = vld [vmem:[%s693_s1 + $0x150] sm:$0xff]  ;;  %v107_v22 = vld [vmem:[%s693_s1 + $0x168] sm:$0xff]  ;;  %v431_v23 = vpack.c.bf16 %v103_v20, %v100_v18  ;;  %v106_v26 = vld [vmem:[%s693_s1 + $0x160] sm:$0xff] }
  0x11   :  { %420 = vmatprep.subr.bf16.mxu1 %v419_v60  ;;  %v405_v24 = vpack.c.bf16 %v107_v22, %v104_v21  ;;  %v109_v27 = vld [vmem:[%s693_s1 + $0x178] sm:$0xff] }
  0x12   :  { %v435_v28 = vpack.c.bf16 %v109_v27, %v106_v26 }
  0x13   :  { %390 = vmatpush1.bf16.msra.mxu0 %v389_v36 }
  0x14   :  { %392 = vmatprep.subr.bf16.mxu0 %v391_v56  ;;  %422 = vmatpush3.bf16.msra.mxu1 %v419_v60 }
  0x17   :  { %394 = vmatpush1.bf16.msra.mxu0 %v393_v61 }
  0x8f   :  { %v19_v37 = vpop.xlane.xlu0 %18  ;;  %v23_v38 = vpop.xlane.xlu1 %22 }
  0x90   :  { %v26_v39 = vmul.f32 0.0078125, %v19_v37  ;;  %v28_v40 = vmul.f32 0.0078125, %v23_v38 }
  0x92   :  { %v553_v41 = vsub.f32 %v14_v0, %v26_v39  ;;  %v555_v42 = vsub.f32 %v16_v1, %v28_v40  ;;  %v88_v0 = vld [vmem:[%s693_s1 + $0xd0] sm:$0xff]  ;;  %v395_v1 = vpack.c.bf16 %v96_v63, %v93_v62 }
  0x93   :  { %v21_v43 = vpop.xlane.xlu0 %20  ;;  %v25_v44 = vpop.xlane.xlu1 %24 }
  0x94   :  { %v27_v45 = vmul.f32 0.0078125, %v21_v43  ;;  %v34_v46 = vmul.f32 %v553_v41, %v553_v41  ;;  %v29_v47 = vmul.f32 0.0078125, %v25_v44  ;;  %v36_v50 = vmul.f32 %v555_v42, %v555_v42  ;;  %396 = vmatprep.subr.bf16.mxu0 %v395_v1 }
  0x96   :  { %v560_v48 = vsub.f32 %v478_v2, %v27_v45  ;;  %38 = vadd.xlane.f32.xlu0 %v34_v46  ;;  %v563_v49 = vsub.f32 %v483_v3, %v29_v47  ;;  %v91_v2 = vld [vmem:[%s693_s1 + $0xe8] sm:$0xff]  ;;  %v92_v3 = vld [vmem:[%s693_s1 + $0xf0] sm:$0xff] }
  0x97   :  { %v423_v5 = vpack.c.bf16 %v91_v2, %v88_v0  ;;  %v397_v6 = vpack.c.bf16 %v95_v4, %v92_v3 }
  0x98   :  { %v35_v51 = vmul.f32 %v560_v48, %v560_v48  ;;  %v37_v52 = vmul.f32 %v563_v49, %v563_v49 }
  0x99   :  { %424 = vmatprep.subr.bf16.mxu1 %v423_v5  ;;  %398 = vmatpush1.bf16.msra.mxu0 %v397_v6 }
  0x9a   :  { %42 = vadd.xlane.f32.xlu0 %v36_v50  ;;  %40 = vadd.xlane.f32.xlu1 %v35_v51 }
  0x9b   :  { %426 = vmatpush3.bf16.msra.mxu1 %v423_v5  ;;  %400 = vmatprep.subr.bf16.mxu0 %v399_v10 }
  0x9c   :  { %428 = vmatprep.subr.bf16.mxu1 %v427_v14 }
  0x9d   :  { %402 = vmatpush1.bf16.msra.mxu0 %v401_v15 }
  0x9e   :  { %44 = vadd.xlane.f32.xlu1 %v37_v52  ;;  %404 = vmatprep.subr.bf16.mxu0 %v403_v19 }
  0x9f   :  { %430 = vmatpush3.bf16.msra.mxu1 %v427_v14 }
  0xa0   :  { %432 = vmatprep.subr.bf16.mxu1 %v431_v23 }
  0xa1   :  { %406 = vmatpush1.bf16.msra.mxu0 %v405_v24 }
  0xa3   :  { %434 = vmatpush3.bf16.msra.mxu1 %v431_v23 }
  0xa4   :  { %436 = vmatprep.subr.bf16.mxu1 %v435_v28 }
  0xa7   :  { %438 = vmatpush3.bf16.msra.mxu1 %v435_v28 }
 0x123   :  { %v39_v29 = vpop.xlane.xlu0 %38 }
 0x124   :  { %v46_v30 = vmul.f32 0.0078125, %v39_v29 }
 0x126   :  { %v50_v31 = vadd.f32 1e-05, %v46_v30 }
 0x127   :  { %v41_v32 = vpop.xlane.xlu1 %40  ;;  %v43_v33 = vpop.xlane.xlu0 %42 }
 0x128   :  { %440 = vrsqrt.f32 %v50_v31  ;;  %v47_v34 = vmul.f32 0.0078125, %v41_v32  ;;  %v48_v35 = vmul.f32 0.0078125, %v43_v33 }
 0x12a   :  { %v51_v36 = vadd.f32 1e-05, %v47_v34  ;;  %v52_v37 = vadd.f32 1e-05, %v48_v35 }
 0x12b   :  { %v45_v38 = vpop.xlane.xlu1 %44 }
 0x12c   :  { %442 = vrsqrt.f32 %v51_v36  ;;  %v49_v39 = vmul.f32 0.0078125, %v45_v38 }
 0x12d   :  { %444 = vrsqrt.f32 %v52_v37 }
 0x12e   :  { %v53_v40 = vadd.f32 1e-05, %v49_v39 }
 0x130   :  { %446 = vrsqrt.f32 %v53_v40 }
 0x132   :  { %v441_v43 = vpop.eup %440 }
 0x133   :  { %v58_v44 = vmul.f32 %v441_v43, %v553_v41  ;;  %v112_v41 = vlaneseq }
 0x135   :  { %192 = vmatmul.mubr.f32.vlgmr.msra.gmra.mrb[0].mxu0 %v58_v44  ;;  %369 = vmatprep.mubr.f32.mxu1 %v58_v44  ;;  %v113_v53 = vshrl.u32 %v112_v41, 7 }
 0x136   :  { %v443_v45 = vpop.eup %442  ;;  %197 = vmatprep.mubr.f32.mxu0 %v448_v25 }
 0x137   :  { %v445_v46 = vpop.eup %444  ;;  %v59_v47 = vmul.f32 %v443_v45, %v560_v48  ;;  %v114_v54 = vsub.s32 0, %v113_v53  ;;  %v110_v48 = vld [vmem:[%s694_s2] sm:$0x7]  ;;  %v118_v55 = vsub.s32 1, %v113_v53  ;;  %v122_v56 = vsub.s32 2, %v113_v53 }
 0x138   :  { %v60_v50 = vmul.f32 %v445_v46, %v555_v42 }
 0x139   :  { %198 = vmatmul.mubr.f32.gmra.mrb[2].mxu0 %v59_v47  ;;  %370 = vmatmul.mubr.f32.vlgmr.msra.gmra.mrb[0].mxu1 %v59_v47  ;;  %v115_v42 = vrot.slane %v110_v48, %v114_v54  ;;  %v119_v57 = vrot.slane %v110_v48, %v118_v55  ;;  %v123_v61 = vrot.slane %v110_v48, %v122_v56 }
 0x13a   :  { %v447_v51 = vpop.eup %446  ;;  %372 = vmatprep.mubr.f32.mxu1 %v60_v50  ;;  %203 = vmatprep.mubr.f32.mxu0 %v448_v25 }
 0x13b   :  { %v61_v52 = vmul.f32 %v447_v51, %v563_v49 }
 0x13d   :  { %204 = vmatmul.mubr.f32.gmra.mrb[4].mxu0 %v60_v50  ;;  %373 = vmatmul.mubr.f32.gmra.mrb[2].mxu1 %v61_v52 }
 0x13e   :  { %209 = vmatprep.mubr.f32.mxu0 %v448_v25 }
 0x141   :  { %210 = vmatmul.mubr.f32.gmra.mrb[6].mxu0 %v61_v52 }
 0x208   :  { %v193_v58 = vpop.f32.mrb[0].mxu0 }
 0x209   :  { %v194_v59 = vadd.f32 %v193_v58, %v115_v42  ;;  %v195_v60 = vpop.f32.mrb[1].mxu0 }
 0x20a   :  { %v196_v49 = vadd.f32 %v195_v60, %v119_v57 }
 0x20b   :  { %301 = vst [vmem:[%s695_s3] sm:$0xff] %v194_v59 }
 0x20c   :  { %302 = vst [vmem:[%s695_s3 + $0x8] sm:$0xff] %v196_v49  ;;  %v199_v62 = vpop.f32.mrb[2].mxu0  ;;  %v371_v63 = vpop.f32.mrb[0].mxu1 }
 0x20d   :  { %v200_v0 = vadd.f32 %v199_v62, %v115_v42  ;;  %v288_v1 = vadd.f32 %v371_v63, %v123_v61  ;;  %v201_v2 = vpop.f32.mrb[3].mxu0  ;;  %v282_v3 = vpop.f32.mrb[1].mxu1 }
 0x20e   :  { %v202_v4 = vadd.f32 %v201_v2, %v119_v57  ;;  %v283_v5 = vadd.f32 %v282_v3, %v123_v61 }
 0x20f   :  { %304 = vst [vmem:[%s695_s3 + $0x18] sm:$0xff] %v200_v0  ;;  %306 = vst [vmem:[%s695_s3 + $0x28] sm:$0xff] %v288_v1 }
 0x210   :  { %305 = vst [vmem:[%s695_s3 + $0x20] sm:$0xff] %v202_v4  ;;  %303 = vst [vmem:[%s695_s3 + $0x10] sm:$0xff] %v283_v5  ;;  %v205_v6 = vpop.f32.mrb[4].mxu0  ;;  %v374_v7 = vpop.f32.mrb[2].mxu1 }
 0x211   :  { %v206_v8 = vadd.f32 %v205_v6, %v115_v42  ;;  %v298_v9 = vadd.f32 %v374_v7, %v123_v61  ;;  %v207_v10 = vpop.f32.mrb[5].mxu0  ;;  %v292_v11 = vpop.f32.mrb[3].mxu1 }
 0x212   :  { %v208_v12 = vadd.f32 %v207_v10, %v119_v57  ;;  %v293_v13 = vadd.f32 %v292_v11, %v123_v61 }
 0x213   :  { %307 = vst [vmem:[%s695_s3 + $0x30] sm:$0xff] %v206_v8  ;;  %312 = vst [vmem:[%s695_s3 + $0x58] sm:$0xff] %v298_v9 }
 0x214   :  { %308 = vst [vmem:[%s695_s3 + $0x38] sm:$0xff] %v208_v12  ;;  %309 = vst [vmem:[%s695_s3 + $0x40] sm:$0xff] %v293_v13  ;;  %v211_v14 = vpop.f32.mrb[6].mxu0 }
 0x215   :  { %v212_v15 = vadd.f32 %v211_v14, %v115_v42  ;;  %v213_v16 = vpop.f32.mrb[7].mxu0 }
 0x216   :  { %v214_v17 = vadd.f32 %v213_v16, %v119_v57 }
 0x217   :  { %310 = vst [vmem:[%s695_s3 + $0x48] sm:$0xff] %v212_v15 }
 0x218   :  { %311 = vst [vmem:[%s695_s3 + $0x50] sm:$0xff] %v214_v17 }

// kernel: transformer_block.4
= control target key start
LH: loop header
LB: loop body
LE: loop exit
PB: predicated region body
PF: predicated region fallthrough
CT: control target
= control target key end

     0   :  { %s1068_s21 = smov 0   ;;  %s1070_s22 = smov 0   ;;  %s1166_s0 = inlined_call_operand.vmem [shape: f32[2,4,16,32], index: 0, kind: input, shape index: {}]   ;;  %s1167_s1 = inlined_call_operand.vmem [shape: f32[2,4,16,32], index: 1, kind: input, shape index: {}]   ;;  %s1168_s2 = inlined_call_operand.vmem [shape: f32[2,4,16,32], index: 2, kind: input, shape index: {}]   ;;  %s1169_s3 = inlined_call_operand.vmem [shape: f32[2,16,128], index: 3, kind: input, shape index: {}]   ;;  %s1170_s4 = inlined_call_operand.vmem [shape: f32[4,32,128], index: 4, kind: input, shape index: {}]   ;;  %s1171_s5 = inlined_call_operand.vmem [shape: f32[1,128], index: 5, kind: input, shape index: {}]   ;;  %s1172_s6 = inlined_call_operand.vmem [shape: f32[2,16,128], index: 6, kind: output, shape index: {}]  }
   0x1   :  { %s1072_s23 = smov 0   ;;  %s1074_s24 = smov 0  }
   0x2   :  { %s1076_s25 = smov 0  }
   0x3 LB: > { %1174 = sst [smem:[#allocation3_spill]] %s1027_s24  ;;  %s25_s26 = sadd.s32 1, %s1023_s23  ;;  %s1031_s25 = sphi %s1076_s25, %s16_s25   ;;  %s1027_s24 = sphi %s1074_s24, %s1182_s24   ;;  %s1023_s23 = sphi %s1072_s23, %s1181_s23   ;;  %s1019_s22 = sphi %s1070_s22, %s1177_s22   ;;  %s1015_s21 = sphi %s1068_s21, %s1180_s21  }
   0x4   : > { %s28_s27 = sadd.s32 1, %s1027_s24  ;;  %p26_p0 = scmp.ge.s32.totalorder %s25_s26, 4 }
   0x5   : > { %p856_p1 = scmp.ge.s32.totalorder %s1031_s25, 1  ;;  %p282_p2 = scmp.lt.s32.totalorder %s1031_s25, 9 }
   0x6   : > { %s1184_s26 = smov (%p26_p0, %s25_s26), 0  ;;  %s1186_s27 = smov (!%p26_p0, %s28_s27), %s1027_s24 }
   0x7   : > { %1175 = sst [smem:[#allocation4_spill]] %s1184_s26  ;;  %p283_p3 = pnand %p856_p1, %p282_p2 }
   0x8   : > { %p30_p4 = scmp.ge.s32.totalorder %s1186_s27, 2  ;;  %p344_p5 = scmp.lt.s32.totalorder (!%p283_p3), %s1019_s22, 1 }
   0x9   : > { %286 = sbr.rel (%p283_p3) target bundleno = 1014 (0x3f6), region = 44  ;;  %p346_p6 = scmp.lt.s32.totalorder (!%p283_p3), %s1015_s21, 3 }
   0xa   : > { %s1188_s27 = smov (%p30_p4, %s1186_s27), 0  ;;  %p872_p7 = scmp.ne.s32.totalorder (!%p283_p3), %s1015_s21, 0 }
   0xb   : > { %1176 = sst [smem:[#allocation5_spill]] %s1188_s27 }
  0x10   : > { %s1190_s22 = smov (!%p344_p5, %s1019_s22), 1  ;;  %v873_v1 = vld [vmem:[%s1171_s5] ss:$0 sm:$0xff] (!%p872_p7) }
  0x11   : > { %s347_s28 = scalar_select %p346_p6, %s1015_s21, 3 }
  0x12   : > { %s858_s29 = sshll.u32 %s1190_s22, 3  ;;  %s885_s30 = sshll.u32 %s1190_s22, 4 }
  0x13   : > { %s857_s7 = sshll.u32 %s347_s28, 1  ;;  %s375_s10 = scalar_lea.vmem %s1169_s3, %s885_s30 }
  0x14   : > { %s350_s11 = sadd.s32 %s858_s29, %s857_s7  ;;  %s886_s12 = sshll.u32 %s347_s28, 5  ;;  %v390_v0 = vld [vmem:[%s375_s10] sm:$0xff] (!%p872_p7)  ;;  %v391_v2 = vld [vmem:[%s375_s10 + $0x8] sm:$0xff] (!%p872_p7) }
  0x15   : > { %s859_s13 = sshll.u32 %s350_s11, 3  ;;  %s1108_s16 = scalar_lea.vmem %s1170_s4, %s886_s12  ;;  %v399_v3 = vadd.f32 (!%p872_p7), %v873_v1, %v390_v0  ;;  %v400_v4 = vadd.f32 (!%p872_p7), %v873_v1, %v391_v2 }
  0x16   : > { %s352_s19 = scalar_lea.vmem %s1166_s0, %s859_s13  ;;  %s361_s22 = scalar_lea.vmem %s1167_s1, %s859_s13 }
  0x17   : > { %s1119_s8 = scalar_lea.vmem %s1168_s2, %s859_s13  ;;  %s1124_s7 = scalar_lea.vmem %s1172_s6, %s885_s30  ;;  %401 = vst [vmem:[#allocation2] sm:$0xff] (!%p872_p7), %v399_v3  ;;  %402 = vst [vmem:[#allocation2 + $0x8] sm:$0xff] (!%p872_p7), %v400_v4 }
  0x18   : > { %389 = sbr.rel (%p872_p7) target bundleno = 31 (0x1f), region = 48 }
  0x1f PF: > { %v405_v5 = vld [vmem:[%s361_s22] sm:$0xff]  ;;  %v406_v6 = vld [vmem:[%s361_s22 + $0x8] sm:$0xff]  ;;  %vm409_vm0 = vcmask 261120   ;;  %v499_v10 = vlaneseq  ;;  %vm508_vm3 = vcmask 130048   ;;  %v616_v42 = vld [vmem:[%s1108_s16 + $0x10] sm:$0xff]  ;;  %p882_p8 = scmp.ne.s32.totalorder %s1015_s21, 3 }
  0x20   : > { %v403_v7 = vld [vmem:[%s352_s19] sm:$0xff]  ;;  %v927_v8 = vpack.c.bf16 %v406_v6, %v405_v5  ;;  %vm928_vm1 = vmpackc.low %vm409_vm0, %vm409_vm0  ;;  %v404_v9 = vld [vmem:[%s352_s19 + $0x8] sm:$0xff] }
  0x21   : > { %906 = vmatprep.mubr.msk.f32.mxu0 %vm409_vm0, %v403_v7  ;;  %v500_v11 = vshrl.u32 %v499_v10, 7  ;;  %v503_v12 = vand.u32 127, %v499_v10  ;;  %v407_v32 = vld [vmem:[%s1119_s8] sm:$0xff]  ;;  %v408_v33 = vld [vmem:[%s1119_s8 + $0x8] sm:$0xff]  ;;  %v617_v43 = vld [vmem:[%s1108_s16 + $0x18] sm:$0xff] }
  0x22   : > { %929 = vmatprep.subr.msk.bf16.mxu0 %vm928_vm1, %v927_v8  ;;  %v933_v34 = vpack.c.bf16 %v408_v33, %v407_v32  ;;  %v614_v35 = vld [vmem:[%s1108_s16] sm:$0xff]  ;;  %v615_v36 = vld [vmem:[%s1108_s16 + $0x8] sm:$0xff]  ;;  %v941_v46 = vpack.c.bf16 %v617_v43, %v616_v42 }
  0x23   : > { %932 = vmatpush3.bf16.xpose.msk.msra.mxu0 %vm928_vm1, %v927_v8  ;;  %v501_v13 = vadd.s32 8, %v500_v11  ;;  %vm504_vm2 = vcmp.gt.s32.totalorder %v503_v12, %v500_v11  ;;  %v937_v37 = vpack.c.bf16 %v615_v36, %v614_v35  ;;  %v613_v49 = vld [vmem:[#allocation2 + $0x8] sm:$0xff]  ;;  %v612_v50 = vld [vmem:[#allocation2] sm:$0xff] }
  0x24   : > { %934 = vmatprep.subr.bf16.mxu1 %v933_v34 }
  0x25   : > { %vm505_vm4 = vcmp.gt.s32.totalorder %v503_v12, %v501_v13  ;;  %936 = vmatpush3.bf16.msra.mxu1 %v933_v34 }
  0x26   : > { %938 = vmatprep.subr.bf16.mxu1 %v937_v37 }
  0x2a   : > { %907 = vmatmul.mubr.msk.f32.vlgmr.msra.gmra.mrb[0].mxu0 %vm409_vm0, %v404_v9 }
  0xfd   : > { %v908_v14 = vpop.f32.mrb[0].mxu0 }
  0xfe   : > { %v488_v15 = vpop.f32.mrb[1].mxu0  ;;  %v498_v16 = vmul.f32 0.17677669, %v908_v14 }
  0xff   : > { %v497_v17 = vmul.f32 0.17677669, %v488_v15 }
 0x100   : > { %v507_v20 = vsel %vm505_vm4, -1e+30, %v498_v16 }
 0x101   : > { %v506_v18 = vsel %vm504_vm2, -1e+30, %v497_v17  ;;  %v512_v21 = vsel %vm508_vm3, %v507_v20, -inf }
 0x102   : > { %v509_v19 = vsel %vm508_vm3, %v506_v18, -inf }
 0x103   : > { %510 = vmax.xlane.f32.xlu0 %v509_v19 }
 0x107   : > { %513 = vmax.xlane.f32.xlu0 %v512_v21 }
 0x190   : > { %v511_v22 = vpop.xlane.xlu0 %510 }
 0x191   : > { %v515_v23 = vsub.f32 %v506_v18, %v511_v22 }
 0x193   : > { %v517_v24 = vmul.f32 1.442695, %v515_v23 }
 0x194   : > { %v514_v25 = vpop.xlane.xlu0 %513 }
 0x195   : > { %985 = vpow2.f32 %v517_v24  ;;  %v516_v26 = vsub.f32 %v507_v20, %v514_v25 }
 0x197   : > { %v519_v27 = vmul.f32 1.442695, %v516_v26 }
 0x199   : > { %987 = vpow2.f32 %v519_v27 }
 0x19f   : > { %v986_v28 = vpop.eup %985 }
 0x1a0   : > { %v521_v29 = vsel %vm508_vm3, %v986_v28, 0.0 }
 0x1a1   : > { %522 = vadd.xlane.f32.xlu1 %v521_v29 }
 0x1a3   : > { %v988_v30 = vpop.eup %987 }
 0x1a4   : > { %v524_v31 = vsel %vm508_vm3, %v988_v30, 0.0 }
 0x1a5   : > { %525 = vadd.xlane.f32.xlu1 %v524_v31 }
 0x22e   : > { %v523_v38 = vpop.xlane.xlu1 %522 }
 0x22f   : > { %989 = vrcp.f32 %v523_v38 }
 0x232   : > { %v526_v39 = vpop.xlane.xlu1 %525 }
 0x233   : > { %991 = vrcp.f32 %v526_v39 }
 0x239   : > { %v990_v40 = vpop.eup %989 }
 0x23a   : > { %v528_v41 = vmul.f32 %v990_v40, %v986_v28 }
 0x23c   : > { %913 = vmatprep.mubr.msk.f32.mxu1 %vm508_vm3, %v528_v41 }
 0x23d   : > { %v992_v44 = vpop.eup %991 }
 0x23e   : > { %v530_v45 = vmul.f32 %v992_v44, %v988_v30 }
 0x240   : > { %914 = vmatmul.mubr.msk.f32.vlgmr.msra.gmra.mrb[0].mxu1 %vm508_vm3, %v530_v45 }
 0x241   : > { %940 = vmatpush3.bf16.msra.mxu1 %v937_v37 }
 0x242   : > { %942 = vmatprep.subr.bf16.mxu1 %v941_v46 }
 0x245   : > { %944 = vmatpush3.bf16.msra.mxu1 %v941_v46 }
 0x313   : > { %v915_v47 = vpop.f32.mrb[0].mxu1 }
 0x314   : > { %v603_v48 = vpop.f32.mrb[1].mxu1 }
 0x315   : > { %924 = vmatprep.mubr.msk.f32.mxu1 %vm409_vm0, %v603_v48 }
 0x316   : > { %925 = vmatmul.mubr.msk.f32.vlgmr.msra.gmra.mrb[2].mxu1 %vm409_vm0, %v915_v47 }
 0x3e7   : > { %706 = sbr.rel (%p882_p8) target bundleno = 1014 (0x3f6), region = 52 }
 0x3e9   : > { %v926_v51 = vpop.f32.mrb[2].mxu1 }
 0x3ea   : > { %v700_v52 = vadd.f32 %v926_v51, %v613_v49  ;;  %v690_v53 = vpop.f32.mrb[3].mxu1 }
 0x3eb   : > { %v699_v54 = vadd.f32 %v690_v53, %v612_v50 }
 0x3ec   : > { %702 = vst [vmem:[#allocation2 + $0x8] sm:$0xff] %v700_v52 }
 0x3ed   : > { %701 = vst [vmem:[#allocation2] sm:$0xff] %v699_v54 }
 0x3f3   : > { %v708_v56 = vld [vmem:[#allocation2 + $0x8] sm:$0xff] }
 0x3f4   : > { %v707_v55 = vld [vmem:[#allocation2] sm:$0xff]  ;;  %710 = vst [vmem:[%s1124_s7 + $0x8] sm:$0xff] %v708_v56 }
 0x3f5   : > { %709 = vst [vmem:[%s1124_s7] sm:$0xff] %v707_v55 }
 0x3f6 PF: > { %s16_s25 = sadd.s32 1, %s1031_s25   ;;  %s1177_s22 = sld [smem:[#allocation3_spill]] }
 0x3f7   : > { %p13_p9 = scmp.ge.s32.totalorder %s16_s25, 10   ;;  %s1178_s24 = sld [smem:[#allocation4_spill]] }
 0x3f8   : > { %s1179_s26 = sld [smem:[#allocation5_spill]]  ;;  %s1180_s21 = smov %s1023_s23 }
 0x3f9   :  { %15 = sbr.rel (!%p13_p9) target bundleno = 3 (0x3), region = 94 }
 0x3fd   : > { %s1181_s23 = smov %s1178_s24 }
 0x3fe   : > { %s1182_s24 = smov %s1179_s26 }

// kernel: transformer_block.5
= control target key start
LH: loop header
LB: loop body
LE: loop exit
PB: predicated region body
PF: predicated region fallthrough
CT: control target
= control target key end

     0   :  { %s1655_s0 = inlined_call_operand.vmem [shape: f32[32,128], index: 0, kind: input, shape index: {}]   ;;  %s1656_s1 = inlined_call_operand.vmem [shape: f32[128,512], index: 1, kind: input, shape index: {}]   ;;  %s1657_s2 = inlined_call_operand.vmem [shape: f32[1,512], index: 2, kind: input, shape index: {}]   ;;  %s1658_s3 = inlined_call_operand.vmem [shape: f32[512,128], index: 3, kind: input, shape index: {}]   ;;  %s1659_s4 = inlined_call_operand.vmem [shape: f32[1,128], index: 4, kind: input, shape index: {}]   ;;  %s1660_s5 = inlined_call_operand.hbm [shape: f32[32,128], index: 5, kind: output, shape index: {}]  }
   0x1   :  { %v1068_v0 = vld [vmem:[%s1655_s0] sm:$0xff]  ;;  %v1073_v1 = vld [vmem:[%s1655_s0 + $0x10] sm:$0xff] }
   0x2   :  { %25 = vadd.xlane.f32.xlu0 %v1068_v0  ;;  %29 = vadd.xlane.f32.xlu1 %v1073_v1 }
   0x3   :  { %10 = vsyncpa [#allocation3], 0  ;;  %v1080_v2 = vld [vmem:[%s1655_s0 + $0x8] sm:$0xff]  ;;  %v1085_v3 = vld [vmem:[%s1655_s0 + $0x18] sm:$0xff]  ;;  %s1032_s9 = smov [#allocation2]  }
   0x4   :  { %v70_v4 = vld [vmem:[%s1656_s1 + $0x8] sm:$0xff]  ;;  %v72_v6 = vld [vmem:[%s1656_s1 + $0x18] sm:$0xff]  ;;  %v69_v9 = vld [vmem:[%s1656_s1] sm:$0xff] }
   0x5   :  { %v74_v5 = vld [vmem:[%s1656_s1 + $0x28] sm:$0xff]  ;;  %v76_v8 = vld [vmem:[%s1656_s1 + $0x38] sm:$0xff]  ;;  %v73_v10 = vld [vmem:[%s1656_s1 + $0x20] sm:$0xff] }
   0x6   :  { %27 = vadd.xlane.f32.xlu0 %v1080_v2  ;;  %31 = vadd.xlane.f32.xlu1 %v1085_v3  ;;  %v831_v7 = vpack.c.bf16 %v74_v5, %v70_v4  ;;  %v863_v11 = vpack.c.bf16 %v76_v8, %v72_v6  ;;  %v833_v12 = vpack.c.bf16 %v73_v10, %v69_v9  ;;  %v71_v13 = vld [vmem:[%s1656_s1 + $0x10] sm:$0xff]  ;;  %v78_v15 = vld [vmem:[%s1656_s1 + $0x48] sm:$0xff]  ;;  %v80_v18 = vld [vmem:[%s1656_s1 + $0x58] sm:$0xff] }
   0x7   :  { %v75_v14 = vld [vmem:[%s1656_s1 + $0x30] sm:$0xff]  ;;  %v82_v17 = vld [vmem:[%s1656_s1 + $0x68] sm:$0xff]  ;;  %v84_v19 = vld [vmem:[%s1656_s1 + $0x78] sm:$0xff] }
   0x8   :  { %832 = vmatprep.subr.bf16.mxu0 %v831_v7  ;;  %v865_v16 = vpack.c.bf16 %v75_v14, %v71_v13  ;;  %864 = vmatprep.subr.bf16.mxu1 %v863_v11  ;;  %v835_v20 = vpack.c.bf16 %v82_v17, %v78_v15  ;;  %v867_v21 = vpack.c.bf16 %v84_v19, %v80_v18  ;;  %v77_v22 = vld [vmem:[%s1656_s1 + $0x40] sm:$0xff]  ;;  %v79_v24 = vld [vmem:[%s1656_s1 + $0x50] sm:$0xff]  ;;  %v86_v27 = vld [vmem:[%s1656_s1 + $0x88] sm:$0xff] }
   0x9   :  { %834 = vmatpush1.bf16.msra.mxu0 %v833_v12  ;;  %v81_v23 = vld [vmem:[%s1656_s1 + $0x60] sm:$0xff]  ;;  %v83_v26 = vld [vmem:[%s1656_s1 + $0x70] sm:$0xff]  ;;  %v90_v28 = vld [vmem:[%s1656_s1 + $0xa8] sm:$0xff] }
   0xa   :  { %866 = vmatpush1.bf16.msra.mxu1 %v865_v16  ;;  %v837_v25 = vpack.c.bf16 %v81_v23, %v77_v22  ;;  %836 = vmatprep.subr.bf16.mxu0 %v835_v20  ;;  %v869_v29 = vpack.c.bf16 %v83_v26, %v79_v24  ;;  %v839_v30 = vpack.c.bf16 %v90_v28, %v86_v27  ;;  %v88_v31 = vld [vmem:[%s1656_s1 + $0x98] sm:$0xff]  ;;  %v85_v33 = vld [vmem:[%s1656_s1 + $0x80] sm:$0xff]  ;;  %v87_v36 = vld [vmem:[%s1656_s1 + $0x90] sm:$0xff] }
   0xb   :  { %868 = vmatprep.subr.bf16.mxu1 %v867_v21  ;;  %v92_v32 = vld [vmem:[%s1656_s1 + $0xb8] sm:$0xff]  ;;  %v89_v35 = vld [vmem:[%s1656_s1 + $0xa0] sm:$0xff]  ;;  %v91_v37 = vld [vmem:[%s1656_s1 + $0xb0] sm:$0xff] }
   0xc   :  { %v871_v34 = vpack.c.bf16 %v92_v32, %v88_v31  ;;  %v841_v38 = vpack.c.bf16 %v89_v35, %v85_v33  ;;  %v94_v39 = vld [vmem:[%s1656_s1 + $0xc8] sm:$0xff]  ;;  %v96_v41 = vld [vmem:[%s1656_s1 + $0xd8] sm:$0xff]  ;;  %v873_v42 = vpack.c.bf16 %v91_v37, %v87_v36  ;;  %v93_v45 = vld [vmem:[%s1656_s1 + $0xc0] sm:$0xff] }
   0xd   :  { %838 = vmatpush1.bf16.msra.mxu0 %v837_v25  ;;  %v98_v40 = vld [vmem:[%s1656_s1 + $0xe8] sm:$0xff]  ;;  %v100_v44 = vld [vmem:[%s1656_s1 + $0xf8] sm:$0xff]  ;;  %v97_v46 = vld [vmem:[%s1656_s1 + $0xe0] sm:$0xff] }
   0xe   :  { %870 = vmatpush1.bf16.msra.mxu1 %v869_v29  ;;  %840 = vmatprep.subr.bf16.mxu0 %v839_v30  ;;  %v843_v43 = vpack.c.bf16 %v98_v40, %v94_v39  ;;  %v875_v47 = vpack.c.bf16 %v100_v44, %v96_v41  ;;  %v95_v48 = vld [vmem:[%s1656_s1 + $0xd0] sm:$0xff]  ;;  %v845_v50 = vpack.c.bf16 %v97_v46, %v93_v45  ;;  %v104_v6 = vld [vmem:[%s1656_s1 + $0x118] sm:$0xff]  ;;  %v101_v9 = vld [vmem:[%s1656_s1 + $0x100] sm:$0xff] }
   0xf   :  { %872 = vmatprep.subr.bf16.mxu1 %v871_v34  ;;  %v99_v49 = vld [vmem:[%s1656_s1 + $0xf0] sm:$0xff]  ;;  %v108_v8 = vld [vmem:[%s1656_s1 + $0x138] sm:$0xff]  ;;  %v105_v10 = vld [vmem:[%s1656_s1 + $0x120] sm:$0xff] }
  0x10   :  { %v877_v51 = vpack.c.bf16 %v99_v49, %v95_v48  ;;  %v879_v11 = vpack.c.bf16 %v108_v8, %v104_v6  ;;  %v849_v12 = vpack.c.bf16 %v105_v10, %v101_v9  ;;  %v103_v13 = vld [vmem:[%s1656_s1 + $0x110] sm:$0xff]  ;;  %v110_v16 = vld [vmem:[%s1656_s1 + $0x148] sm:$0xff]  ;;  %v112_v18 = vld [vmem:[%s1656_s1 + $0x158] sm:$0xff] }
  0x11   :  { %842 = vmatpush1.bf16.msra.mxu0 %v841_v38  ;;  %v107_v14 = vld [vmem:[%s1656_s1 + $0x130] sm:$0xff]  ;;  %v114_v17 = vld [vmem:[%s1656_s1 + $0x168] sm:$0xff]  ;;  %v116_v20 = vld [vmem:[%s1656_s1 + $0x178] sm:$0xff] }
  0x12   :  { %874 = vmatpush1.bf16.msra.mxu1 %v873_v42  ;;  %844 = vmatprep.subr.bf16.mxu0 %v843_v43  ;;  %v881_v15 = vpack.c.bf16 %v107_v14, %v103_v13  ;;  %v851_v19 = vpack.c.bf16 %v114_v17, %v110_v16  ;;  %v109_v21 = vld [vmem:[%s1656_s1 + $0x140] sm:$0xff]  ;;  %v883_v23 = vpack.c.bf16 %v116_v20, %v112_v18  ;;  %v111_v25 = vld [vmem:[%s1656_s1 + $0x150] sm:$0xff]  ;;  %v118_v28 = vld [vmem:[%s1656_s1 + $0x188] sm:$0xff] }
  0x13   :  { %876 = vmatprep.subr.bf16.mxu1 %v875_v47  ;;  %v113_v22 = vld [vmem:[%s1656_s1 + $0x160] sm:$0xff]  ;;  %v115_v26 = vld [vmem:[%s1656_s1 + $0x170] sm:$0xff]  ;;  %v122_v29 = vld [vmem:[%s1656_s1 + $0x1a8] sm:$0xff] }
  0x14   :  { %v853_v24 = vpack.c.bf16 %v113_v22, %v109_v21  ;;  %v885_v27 = vpack.c.bf16 %v115_v26, %v111_v25  ;;  %v120_v30 = vld [vmem:[%s1656_s1 + $0x198] sm:$0xff]  ;;  %v855_v31 = vpack.c.bf16 %v122_v29, %v118_v28  ;;  %v117_v33 = vld [vmem:[%s1656_s1 + $0x180] sm:$0xff]  ;;  %v119_v37 = vld [vmem:[%s1656_s1 + $0x190] sm:$0xff] }
  0x15   :  { %846 = vmatpush1.bf16.msra.mxu0 %v845_v50  ;;  %v124_v32 = vld [vmem:[%s1656_s1 + $0x1b8] sm:$0xff]  ;;  %v121_v34 = vld [vmem:[%s1656_s1 + $0x1a0] sm:$0xff]  ;;  %v123_v38 = vld [vmem:[%s1656_s1 + $0x1b0] sm:$0xff] }
  0x16   :  { %878 = vmatpush1.bf16.msra.mxu1 %v877_v51  ;;  %v887_v35 = vpack.c.bf16 %v124_v32, %v120_v30  ;;  %v857_v36 = vpack.c.bf16 %v121_v34, %v117_v33  ;;  %v889_v39 = vpack.c.bf16 %v123_v38, %v119_v37  ;;  %v126_v40 = vld [vmem:[%s1656_s1 + $0x1c8] sm:$0xff]  ;;  %v128_v42 = vld [vmem:[%s1656_s1 + $0x1d8] sm:$0xff]  ;;  %v125_v45 = vld [vmem:[%s1656_s1 + $0x1c0] sm:$0xff]  ;;  %v1031_v51 = vmov 0.0  }
  0x17   :  { %880 = vmatprep.subr.bf16.mxu1 %v879_v11  ;;  %v130_v41 = vld [vmem:[%s1656_s1 + $0x1e8] sm:$0xff]  ;;  %v132_v44 = vld [vmem:[%s1656_s1 + $0x1f8] sm:$0xff]  ;;  %v129_v46 = vld [vmem:[%s1656_s1 + $0x1e0] sm:$0xff]  ;;  %219 = vmatprep.mubr.f32.mxu0 %v1031_v51 }
  0x18   :  { %v859_v43 = vpack.c.bf16 %v130_v41, %v126_v40  ;;  %v891_v47 = vpack.c.bf16 %v132_v44, %v128_v42  ;;  %v861_v48 = vpack.c.bf16 %v129_v46, %v125_v45  ;;  %v127_v49 = vld [vmem:[%s1656_s1 + $0x1d0] sm:$0xff]  ;;  %308 = vmatprep.mubr.f32.mxu1 %v1031_v51  ;;  %v477_v11 = vld [vmem:[%s1658_s3] sm:$0xff]  ;;  %v510_v14 = vld [vmem:[%s1658_s3 + $0x108] sm:$0xff] }
  0x19   :  { %v131_v50 = vld [vmem:[%s1656_s1 + $0x1f0] sm:$0xff]  ;;  %v509_v13 = vld [vmem:[%s1658_s3 + $0x100] sm:$0xff]  ;;  %v528_v26 = vld [vmem:[%s1658_s3 + $0x198] sm:$0xff] }
  0x1a   :  { %882 = vmatpush1.bf16.msra.mxu1 %v881_v15  ;;  %v929_v18 = vpack.c.bf16 %v510_v14, %v509_v13  ;;  %v511_v30 = vld [vmem:[%s1658_s3 + $0x110] sm:$0xff]  ;;  %v497_v33 = vld [vmem:[%s1658_s3 + $0xa0] sm:$0xff]  ;;  %v498_v34 = vld [vmem:[%s1658_s3 + $0xa8] sm:$0xff] }
  0x1b   :  { %884 = vmatprep.subr.bf16.mxu1 %v883_v23  ;;  %v530_v37 = vld [vmem:[%s1658_s3 + $0x1a8] sm:$0xff]  ;;  %v481_v38 = vld [vmem:[%s1658_s3 + $0x20] sm:$0xff]  ;;  %v499_v45 = vld [vmem:[%s1658_s3 + $0xb0] sm:$0xff] }
  0x1c   :  { %v513_v42 = vld [vmem:[%s1658_s3 + $0x120] sm:$0xff]  ;;  %v500_v46 = vld [vmem:[%s1658_s3 + $0xb8] sm:$0xff]  ;;  %v487_v14 = vld [vmem:[%s1658_s3 + $0x50] sm:$0xff] }
  0x1d   :  { %v536_v13 = vld [vmem:[%s1658_s3 + $0x1d8] sm:$0xff] }
  0x1e   :  { %886 = vmatpush1.bf16.msra.mxu1 %v885_v27  ;;  %v480_v27 = vld [vmem:[%s1658_s3 + $0x18] sm:$0xff] }
  0x1f   :  { %888 = vmatprep.subr.bf16.mxu1 %v887_v35  ;;  %v529_v35 = vld [vmem:[%s1658_s3 + $0x1a0] sm:$0xff] }
  0x20   :  { %v935_v40 = vpack.c.bf16 %v530_v37, %v529_v35  ;;  %v491_v35 = vld [vmem:[%s1658_s3 + $0x70] sm:$0xff] }
  0x21   :  { %v523_v37 = vld [vmem:[%s1658_s3 + $0x170] sm:$0xff] }
  0x22   :  { %890 = vmatpush1.bf16.msra.mxu1 %v889_v39  ;;  %v482_v39 = vld [vmem:[%s1658_s3 + $0x28] sm:$0xff] }
  0x23   :  { %892 = vmatprep.subr.bf16.mxu1 %v891_v47  ;;  %v905_v41 = vpack.c.bf16 %v482_v39, %v481_v38  ;;  %v531_v47 = vld [vmem:[%s1658_s3 + $0x1b0] sm:$0xff]  ;;  %v524_v39 = vld [vmem:[%s1658_s3 + $0x178] sm:$0xff] }
  0x8f   :  { %v26_v52 = vpop.xlane.xlu0 %25  ;;  %v30_v53 = vpop.xlane.xlu1 %29 }
  0x90   :  { %v33_v54 = vmul.f32 0.0078125, %v26_v52  ;;  %v35_v55 = vmul.f32 0.0078125, %v30_v53  ;;  %v893_v52 = vpack.c.bf16 %v131_v50, %v127_v49  ;;  %v493_v53 = vld [vmem:[%s1658_s3 + $0x80] sm:$0xff]  ;;  %v532_v49 = vld [vmem:[%s1658_s3 + $0x1b8] sm:$0xff]  ;;  %v483_v50 = vld [vmem:[%s1658_s3 + $0x30] sm:$0xff] }
  0x92   :  { %v1186_v56 = vsub.f32 %v1068_v0, %v33_v54  ;;  %v1189_v57 = vsub.f32 %v1073_v1, %v35_v55  ;;  %894 = vmatpush1.bf16.msra.mxu1 %v893_v52  ;;  %v494_v54 = vld [vmem:[%s1658_s3 + $0x88] sm:$0xff]  ;;  %v525_v55 = vld [vmem:[%s1658_s3 + $0x180] sm:$0xff]  ;;  %v939_v52 = vpack.c.bf16 %v532_v49, %v531_v47 }
  0x93   :  { %v28_v58 = vpop.xlane.xlu0 %27  ;;  %v32_v59 = vpop.xlane.xlu1 %31 }
  0x94   :  { %v34_v60 = vmul.f32 0.0078125, %v28_v58  ;;  %v41_v61 = vmul.f32 %v1186_v56, %v1186_v56  ;;  %v36_v62 = vmul.f32 0.0078125, %v32_v59  ;;  %v43_v0 = vmul.f32 %v1189_v57, %v1189_v57  ;;  %v526_v59 = vld [vmem:[%s1658_s3 + $0x188] sm:$0xff] }
  0x95   :  { %v895_v58 = vpack.c.bf16 %v494_v54, %v493_v53  ;;  %v515_v54 = vld [vmem:[%s1658_s3 + $0x130] sm:$0xff] }
  0x96   :  { %v1194_v63 = vsub.f32 %v1080_v2, %v34_v60  ;;  %45 = vadd.xlane.f32.xlu0 %v41_v61  ;;  %v1197_v4 = vsub.f32 %v1085_v3, %v36_v62  ;;  %v102_v2 = vld [vmem:[%s1656_s1 + $0x108] sm:$0xff]  ;;  %v927_v60 = vpack.c.bf16 %v526_v59, %v525_v55  ;;  %v516_v55 = vld [vmem:[%s1658_s3 + $0x138] sm:$0xff]  ;;  %v501_v59 = vld [vmem:[%s1658_s3 + $0xc0] sm:$0xff] }
  0x97   :  { %v106_v3 = vld [vmem:[%s1656_s1 + $0x128] sm:$0xff]  ;;  %s731_s1 = sshll.u32 %s1032_s9, 4  ;;  %s732_s1 = int_to_ptr.vmem [resolvable:$true] %s731_s1 }
  0x98   :  { %v42_v1 = vmul.f32 %v1194_v63, %v1194_v63  ;;  %v44_v5 = vmul.f32 %v1197_v4, %v1197_v4  ;;  %v847_v7 = vpack.c.bf16 %v106_v3, %v102_v2  ;;  %928 = vmatprep.subr.bf16.mxu1 %v927_v60  ;;  %v502_v60 = vld [vmem:[%s1658_s3 + $0xc8] sm:$0xff]  ;;  %s1007_s12 = scalar_lea.vmem %s732_s1, 512  ;;  %p1012_p1 = scmp.lt.s32.totalorder %s732_s1, %s732_s1 }
  0x99   :  { %p1008_p0 = scmp.ne.s32.totalorder %s732_s1, %s1007_s12  ;;  %p1013_p2 = scmp.lt.s32.totalorder %s1007_s12, %s1007_s12 }
  0x9a   :  { %49 = vadd.xlane.f32.xlu0 %v43_v0  ;;  %47 = vadd.xlane.f32.xlu1 %v42_v1 }
  0x9b   :  { %848 = vmatprep.subr.bf16.mxu0 %v847_v7  ;;  %p1014_p3 = por %p1013_p2, %p1012_p1 }
  0x9c   :  { %850 = vmatpush1.bf16.msra.mxu0 %v849_v12  ;;  %v478_v12 = vld [vmem:[%s1658_s3 + $0x8] sm:$0xff] }
  0x9d   :  { %852 = vmatprep.subr.bf16.mxu0 %v851_v19  ;;  %v897_v17 = vpack.c.bf16 %v478_v12, %v477_v11  ;;  %v535_v11 = vld [vmem:[%s1658_s3 + $0x1d0] sm:$0xff]  ;;  %p1015_p4 = pnand %p1014_p3, %p1008_p0 }
  0x9e   :  { %51 = vadd.xlane.f32.xlu1 %v44_v5 }
  0xa0   :  { %854 = vmatpush1.bf16.msra.mxu0 %v853_v24  ;;  %v496_v24 = vld [vmem:[%s1658_s3 + $0x98] sm:$0xff] }
  0xa1   :  { %856 = vmatprep.subr.bf16.mxu0 %v855_v31  ;;  %v512_v31 = vld [vmem:[%s1658_s3 + $0x118] sm:$0xff] }
  0xa2   :  { %v933_v32 = vpack.c.bf16 %v512_v31, %v511_v30  ;;  %v508_v30 = vld [vmem:[%s1658_s3 + $0xf8] sm:$0xff]  ;;  %v539_v31 = vld [vmem:[%s1658_s3 + $0x1f0] sm:$0xff] }
  0xa4   :  { %858 = vmatpush1.bf16.msra.mxu0 %v857_v36  ;;  %v903_v36 = vpack.c.bf16 %v498_v34, %v497_v33 }
  0xa5   :  { %860 = vmatprep.subr.bf16.mxu0 %v859_v43  ;;  %v514_v43 = vld [vmem:[%s1658_s3 + $0x128] sm:$0xff] }
  0xa6   :  { %v937_v44 = vpack.c.bf16 %v514_v43, %v513_v42 }
  0xa8   :  { %862 = vmatpush1.bf16.msra.mxu0 %v861_v48  ;;  %v907_v48 = vpack.c.bf16 %v500_v46, %v499_v45  ;;  %v133_v45 = vld [vmem:[%s1657_s2] sm:$0xf] }
  0xa9   :  { %896 = vmatprep.subr.bf16.mxu0 %v895_v58  ;;  %v941_v58 = vpack.c.bf16 %v516_v55, %v515_v54 }
 0x123   :  { %v46_v61 = vpop.xlane.xlu0 %45 }
 0x124   :  { %v53_v62 = vmul.f32 0.0078125, %v46_v61  ;;  %v533_v61 = vld [vmem:[%s1658_s3 + $0x1c0] sm:$0xff] }
 0x126   :  { %v57_v0 = vadd.f32 1e-05, %v53_v62  ;;  %v911_v62 = vpack.c.bf16 %v502_v60, %v501_v59 }
 0x127   :  { %v48_v1 = vpop.xlane.xlu1 %47  ;;  %v50_v5 = vpop.xlane.xlu0 %49 }
 0x128   :  { %963 = vrsqrt.f32 %v57_v0  ;;  %v54_v2 = vmul.f32 0.0078125, %v48_v1  ;;  %v55_v3 = vmul.f32 0.0078125, %v50_v5  ;;  %v534_v0 = vld [vmem:[%s1658_s3 + $0x1c8] sm:$0xff]  ;;  %v485_v1 = vld [vmem:[%s1658_s3 + $0x40] sm:$0xff] }
 0x129   :  { %v486_v5 = vld [vmem:[%s1658_s3 + $0x48] sm:$0xff] }
 0x12a   :  { %v58_v6 = vadd.f32 1e-05, %v54_v2  ;;  %v59_v7 = vadd.f32 1e-05, %v55_v3  ;;  %v943_v2 = vpack.c.bf16 %v534_v0, %v533_v61  ;;  %v913_v3 = vpack.c.bf16 %v486_v5, %v485_v1 }
 0x12b   :  { %v52_v8 = vpop.xlane.xlu1 %51 }
 0x12c   :  { %965 = vrsqrt.f32 %v58_v6  ;;  %v56_v9 = vmul.f32 0.0078125, %v52_v8  ;;  %v517_v6 = vld [vmem:[%s1658_s3 + $0x140] sm:$0xff] }
 0x12d   :  { %967 = vrsqrt.f32 %v59_v7  ;;  %v518_v7 = vld [vmem:[%s1658_s3 + $0x148] sm:$0xff] }
 0x12e   :  { %v60_v10 = vadd.f32 1e-05, %v56_v9  ;;  %v945_v8 = vpack.c.bf16 %v518_v7, %v517_v6  ;;  %v503_v9 = vld [vmem:[%s1658_s3 + $0xd0] sm:$0xff] }
 0x130   :  { %969 = vrsqrt.f32 %v60_v10  ;;  %v504_v10 = vld [vmem:[%s1658_s3 + $0xd8] sm:$0xff] }
 0x131   :  { %v915_v12 = vpack.c.bf16 %v504_v10, %v503_v9 }
 0x132   :  { %v964_v15 = vpop.eup %963 }
 0x133   :  { %v65_v16 = vmul.f32 %v964_v15, %v1186_v56  ;;  %v488_v15 = vld [vmem:[%s1658_s3 + $0x58] sm:$0xff] }
 0x135   :  { %220 = vmatmul.mubr.f32.vlgmr.msra.gmra.mrb[0].mxu0 %v65_v16  ;;  %309 = vmatmul.mubr.f32.vlgmr.msra.gmra.mrb[0].mxu1 %v65_v16  ;;  %v947_v16 = vpack.c.bf16 %v536_v13, %v535_v11 }
 0x136   :  { %v966_v19 = vpop.eup %965  ;;  %225 = vmatprep.mubr.f32.mxu0 %v1031_v51  ;;  %314 = vmatprep.mubr.f32.mxu1 %v1031_v51 }
 0x137   :  { %v66_v20 = vmul.f32 %v966_v19, %v1194_v63  ;;  %898 = vmatpush3.bf16.msra.mxu0 %v897_v17  ;;  %930 = vmatpush3.bf16.msra.mxu1 %v929_v18  ;;  %v968_v21 = vpop.eup %967  ;;  %v495_v63 = vld [vmem:[%s1658_s3 + $0x90] sm:$0xff]  ;;  %v917_v17 = vpack.c.bf16 %v488_v15, %v487_v14  ;;  %v520_v19 = vld [vmem:[%s1658_s3 + $0x158] sm:$0xff] }
 0x138   :  { %v67_v22 = vmul.f32 %v968_v21, %v1189_v57  ;;  %v527_v57 = vld [vmem:[%s1658_s3 + $0x190] sm:$0xff]  ;;  %v899_v25 = vpack.c.bf16 %v496_v24, %v495_v63  ;;  %v505_v21 = vld [vmem:[%s1658_s3 + $0xe0] sm:$0xff]  ;;  %v538_v63 = vld [vmem:[%s1658_s3 + $0x1e8] sm:$0xff] }
 0x139   :  { %226 = vmatmul.mubr.f32.gmra.mrb[2].mxu0 %v66_v20  ;;  %315 = vmatmul.mubr.f32.gmra.mrb[2].mxu1 %v66_v20  ;;  %v931_v28 = vpack.c.bf16 %v528_v26, %v527_v57  ;;  %v519_v18 = vld [vmem:[%s1658_s3 + $0x150] sm:$0xff]  ;;  %v489_v24 = vld [vmem:[%s1658_s3 + $0x60] sm:$0xff]  ;;  %v490_v57 = vld [vmem:[%s1658_s3 + $0x68] sm:$0xff] }
 0x13a   :  { %231 = vmatprep.mubr.f32.mxu0 %v1031_v51  ;;  %320 = vmatprep.mubr.f32.mxu1 %v1031_v51  ;;  %v970_v23 = vpop.eup %969  ;;  %v949_v20 = vpack.c.bf16 %v520_v19, %v519_v18  ;;  %v921_v26 = vpack.c.bf16 %v490_v57, %v489_v24 }
 0x13b   :  { %v68_v56 = vmul.f32 %v970_v23, %v1197_v4  ;;  %v479_v4 = vld [vmem:[%s1658_s3 + $0x10] sm:$0xff]  ;;  %900 = vmatprep.subr.bf16.mxu0 %v899_v25  ;;  %932 = vmatprep.subr.bf16.mxu1 %v931_v28  ;;  %v537_v23 = vld [vmem:[%s1658_s3 + $0x1e0] sm:$0xff] }
 0x13c   :  { %v901_v29 = vpack.c.bf16 %v480_v27, %v479_v4  ;;  %934 = vmatpush3.bf16.msra.mxu1 %v933_v32  ;;  %v951_v25 = vpack.c.bf16 %v538_v63, %v537_v23  ;;  %v521_v4 = vld [vmem:[%s1658_s3 + $0x160] sm:$0xff]  ;;  %v522_v27 = vld [vmem:[%s1658_s3 + $0x168] sm:$0xff]  ;;  %v507_v28 = vld [vmem:[%s1658_s3 + $0xf0] sm:$0xff] }
 0x13d   :  { %232 = vmatmul.mubr.f32.gmra.mrb[4].mxu0 %v67_v22  ;;  %321 = vmatmul.mubr.f32.gmra.mrb[4].mxu1 %v67_v22  ;;  %v506_v22 = vld [vmem:[%s1658_s3 + $0xe8] sm:$0xff]  ;;  %v540_v32 = vld [vmem:[%s1658_s3 + $0x1f8] sm:$0xff]  ;;  %v923_v33 = vpack.c.bf16 %v508_v30, %v507_v28 }
 0x13e   :  { %237 = vmatprep.mubr.f32.mxu0 %v1031_v51  ;;  %326 = vmatprep.mubr.f32.mxu1 %v1031_v51  ;;  %v484_v51 = vld [vmem:[%s1658_s3 + $0x38] sm:$0xff]  ;;  %v955_v34 = vpack.c.bf16 %v540_v32, %v539_v31 }
 0x13f   :  { %902 = vmatpush3.bf16.msra.mxu0 %v901_v29  ;;  %936 = vmatprep.subr.bf16.mxu1 %v935_v40  ;;  %v909_v53 = vpack.c.bf16 %v484_v51, %v483_v50  ;;  %v953_v29 = vpack.c.bf16 %v522_v27, %v521_v4  ;;  %v957_v40 = vpack.c.bf16 %v524_v39, %v523_v37 }
 0x140   :  { %904 = vmatprep.subr.bf16.mxu0 %v903_v36  ;;  %938 = vmatpush3.bf16.msra.mxu1 %v937_v44  ;;  %v492_v36 = vld [vmem:[%s1658_s3 + $0x78] sm:$0xff] }
 0x141   :  { %238 = vmatmul.mubr.f32.gmra.mrb[6].mxu0 %v68_v56  ;;  %327 = vmatmul.mubr.f32.gmra.mrb[6].mxu1 %v68_v56  ;;  %v919_v56 = vpack.c.bf16 %v506_v22, %v505_v21  ;;  %v925_v38 = vpack.c.bf16 %v492_v36, %v491_v35 }
 0x142   :  { %940 = vmatprep.subr.bf16.mxu1 %v939_v52 }
 0x143   :  { %906 = vmatpush3.bf16.msra.mxu0 %v905_v41  ;;  %v135_v41 = vlaneseq }
 0x144   :  { %908 = vmatprep.subr.bf16.mxu0 %v907_v48  ;;  %942 = vmatpush3.bf16.msra.mxu1 %v941_v58 }
 0x145   :  { %944 = vmatprep.subr.bf16.mxu1 %v943_v2  ;;  %v136_v42 = vshrl.u32 %v135_v41, 7 }
 0x147   :  { %910 = vmatpush3.bf16.msra.mxu0 %v909_v53  ;;  %v137_v43 = vsub.s32 0, %v136_v42  ;;  %v145_v44 = vsub.s32 2, %v136_v42  ;;  %v141_v46 = vsub.s32 1, %v136_v42  ;;  %v149_v47 = vsub.s32 3, %v136_v42 }
 0x148   :  { %912 = vmatprep.subr.bf16.mxu0 %v911_v62  ;;  %946 = vmatpush3.bf16.msra.mxu1 %v945_v8 }
 0x149   :  { %948 = vmatprep.subr.bf16.mxu1 %v947_v16  ;;  %v1500_v48 = vrot.slane %v133_v45, %v137_v43  ;;  %v1502_v49 = vrot.slane %v133_v45, %v145_v44  ;;  %v1504_v50 = vrot.slane %v133_v45, %v141_v46  ;;  %v1506_v51 = vrot.slane %v133_v45, %v149_v47 }
 0x14b   :  { %914 = vmatpush3.bf16.msra.mxu0 %v913_v3 }
 0x14c   :  { %916 = vmatprep.subr.bf16.mxu0 %v915_v12  ;;  %950 = vmatpush3.bf16.msra.mxu1 %v949_v20 }
 0x14d   :  { %952 = vmatprep.subr.bf16.mxu1 %v951_v25 }
 0x14f   :  { %918 = vmatpush3.bf16.msra.mxu0 %v917_v17 }
 0x150   :  { %920 = vmatprep.subr.bf16.mxu0 %v919_v56  ;;  %954 = vmatpush3.bf16.msra.mxu1 %v953_v29 }
 0x151   :  { %956 = vmatprep.subr.bf16.mxu1 %v955_v34 }
 0x153   :  { %922 = vmatpush3.bf16.msra.mxu0 %v921_v26 }
 0x154   :  { %924 = vmatprep.subr.bf16.mxu0 %v923_v33  ;;  %958 = vmatpush3.bf16.msra.mxu1 %v957_v40 }
 0x157   :  { %926 = vmatpush3.bf16.msra.mxu0 %v925_v38 }
 0x208   :  { %v221_v52 = vpop.f32.mrb[0].mxu0  ;;  %v310_v53 = vpop.f32.mrb[0].mxu1 }
 0x209   :  { %v222_v54 = vadd.f32 %v221_v52, %v1500_v48  ;;  %v311_v55 = vadd.f32 %v310_v53, %v1502_v49  ;;  %v223_v58 = vpop.f32.mrb[1].mxu0  ;;  %v312_v59 = vpop.f32.mrb[1].mxu1 }
 0x20a   :  { %v1511_v60 = vadd.f32 %v223_v58, %v1504_v50  ;;  %v1514_v61 = vadd.f32 %v312_v59, %v1506_v51 }
 0x20b   :  { %v349_v62 = vmul.f32 0.044715, %v222_v54  ;;  %v351_v0 = vmul.f32 0.044715, %v311_v55  ;;  %v1552_v38 = vmul.f32 0.5, %v222_v54  ;;  %v1571_v59 = vmul.f32 0.5, %v311_v55 }
 0x20c   :  { %v350_v1 = vmul.f32 0.044715, %v1511_v60  ;;  %v352_v5 = vmul.f32 0.044715, %v1514_v61  ;;  %v227_v2 = vpop.f32.mrb[2].mxu0  ;;  %v316_v3 = vpop.f32.mrb[2].mxu1 }
 0x20d   :  { %v365_v6 = vmul.f32 %v349_v62, %v222_v54  ;;  %v367_v7 = vmul.f32 %v351_v0, %v311_v55  ;;  %v229_v8 = vpop.f32.mrb[3].mxu0  ;;  %v318_v9 = vpop.f32.mrb[3].mxu1  ;;  %v1521_v12 = vadd.f32 %v227_v2, %v1500_v48  ;;  %v1531_v22 = vadd.f32 %v316_v3, %v1502_v49 }
 0x20e   :  { %v366_v10 = vmul.f32 %v350_v1, %v1511_v60  ;;  %v368_v11 = vmul.f32 %v352_v5, %v1514_v61  ;;  %v1524_v13 = vadd.f32 %v229_v8, %v1504_v50  ;;  %v1527_v16 = vadd.f32 %v318_v9, %v1506_v51 }
 0x20f   :  { %v381_v14 = vmul.f32 %v365_v6, %v222_v54  ;;  %v383_v15 = vmul.f32 %v367_v7, %v311_v55  ;;  %v353_v24 = vmul.f32 0.044715, %v1521_v12  ;;  %v355_v34 = vmul.f32 0.044715, %v1531_v22 }
 0x210   :  { %v233_v17 = vpop.f32.mrb[4].mxu0  ;;  %v322_v18 = vpop.f32.mrb[4].mxu1  ;;  %v382_v19 = vmul.f32 %v366_v10, %v1511_v60  ;;  %v384_v63 = vmul.f32 %v368_v11, %v1514_v61  ;;  %v354_v57 = vmul.f32 0.044715, %v1524_v13  ;;  %v356_v4 = vmul.f32 0.044715, %v1527_v16 }
 0x211   :  { %v397_v20 = vadd.f32 %v381_v14, %v222_v54  ;;  %v399_v21 = vadd.f32 %v383_v15, %v311_v55  ;;  %v235_v23 = vpop.f32.mrb[5].mxu0  ;;  %v324_v56 = vpop.f32.mrb[5].mxu1  ;;  %v1537_v25 = vadd.f32 %v233_v17, %v1500_v48  ;;  %v1547_v30 = vadd.f32 %v322_v18, %v1502_v49 }
 0x212   :  { %v1541_v27 = vadd.f32 %v235_v23, %v1504_v50  ;;  %v1544_v28 = vadd.f32 %v324_v56, %v1506_v51  ;;  %v398_v33 = vadd.f32 %v382_v19, %v1511_v60  ;;  %v400_v37 = vadd.f32 %v384_v63, %v1514_v61 }
 0x213   :  { %v413_v26 = vmul.f32 0.7978846, %v397_v20  ;;  %v415_v29 = vmul.f32 0.7978846, %v399_v21  ;;  %v357_v39 = vmul.f32 0.044715, %v1537_v25  ;;  %v369_v41 = vmul.f32 %v353_v24, %v1521_v12 }
 0x214   :  { %v239_v31 = vpop.f32.mrb[6].mxu0  ;;  %v328_v32 = vpop.f32.mrb[6].mxu1  ;;  %v358_v40 = vmul.f32 0.044715, %v1541_v27  ;;  %v370_v42 = vmul.f32 %v354_v57, %v1524_v13  ;;  %v372_v43 = vmul.f32 %v356_v4, %v1527_v16  ;;  %v360_v44 = vmul.f32 0.044715, %v1544_v28 }
 0x215   :  { %v241_v35 = vpop.f32.mrb[7].mxu0  ;;  %v330_v36 = vpop.f32.mrb[7].mxu1  ;;  %971 = vtanh.f32 %v413_v26  ;;  %v359_v45 = vmul.f32 0.044715, %v1547_v30  ;;  %v1562_v46 = vadd.f32 %v239_v31, %v1500_v48  ;;  %v414_v47 = vmul.f32 0.7978846, %v398_v33 }
 0x216   :  { %973 = vtanh.f32 %v415_v29  ;;  %v371_v52 = vmul.f32 %v355_v34, %v1531_v22  ;;  %v1566_v53 = vadd.f32 %v328_v32, %v1502_v49  ;;  %v1569_v54 = vadd.f32 %v241_v35, %v1504_v50 }
 0x217   :  { %v416_v58 = vmul.f32 0.7978846, %v400_v37  ;;  %v373_v62 = vmul.f32 %v357_v39, %v1537_v25  ;;  %v374_v0 = vmul.f32 %v358_v40, %v1541_v27  ;;  %975 = vtanh.f32 %v414_v47 }
 0x218   :  { %v376_v48 = vmul.f32 %v360_v44, %v1544_v28  ;;  %v1577_v1 = vadd.f32 %v330_v36, %v1506_v51  ;;  %v386_v49 = vmul.f32 %v370_v42, %v1524_v13  ;;  %v375_v5 = vmul.f32 %v359_v45, %v1547_v30 }
 0x219   :  { %977 = vtanh.f32 %v416_v58  ;;  %v361_v50 = vmul.f32 0.044715, %v1562_v46  ;;  %v388_v55 = vmul.f32 %v372_v43, %v1527_v16  ;;  %v385_v2 = vmul.f32 %v369_v41, %v1521_v12 }
 0x21a   :  { %v363_v3 = vmul.f32 0.044715, %v1566_v53  ;;  %v362_v6 = vmul.f32 0.044715, %v1569_v54  ;;  %v402_v7 = vadd.f32 %v386_v49, %v1524_v13  ;;  %v387_v51 = vmul.f32 %v371_v52, %v1531_v22 }
 0x21b   :  { %v334_v8 = vmul.f32 0.5, %v1511_v60  ;;  %v404_v9 = vadd.f32 %v388_v55, %v1527_v16  ;;  %v401_v10 = vadd.f32 %v385_v2, %v1521_v12  ;;  %v390_v11 = vmul.f32 %v374_v0, %v1541_v27 }
 0x21c   :  { %v364_v14 = vmul.f32 0.044715, %v1577_v1  ;;  %v418_v15 = vmul.f32 0.7978846, %v402_v7  ;;  %v403_v17 = vadd.f32 %v387_v51, %v1531_v22  ;;  %v392_v18 = vmul.f32 %v376_v48, %v1544_v28 }
 0x21d   :  { %v377_v20 = vmul.f32 %v361_v50, %v1562_v46  ;;  %v420_v21 = vmul.f32 0.7978846, %v404_v9  ;;  %v417_v23 = vmul.f32 0.7978846, %v401_v10  ;;  %v406_v60 = vadd.f32 %v390_v11, %v1541_v27 }
 0x21e   :  { %v378_v56 = vmul.f32 %v362_v6, %v1569_v54  ;;  %979 = vtanh.f32 %v418_v15  ;;  %v419_v63 = vmul.f32 0.7978846, %v403_v17  ;;  %v408_v24 = vadd.f32 %v392_v18, %v1544_v28 }
 0x21f   :  { %v972_v19 = vpop.eup %971  ;;  %v336_v26 = vmul.f32 0.5, %v1514_v61  ;;  %981 = vtanh.f32 %v420_v21  ;;  %v422_v4 = vmul.f32 0.7978846, %v406_v60  ;;  %v389_v29 = vmul.f32 %v373_v62, %v1537_v25 }
 0x220   :  { %v974_v57 = vpop.eup %973  ;;  %v380_v31 = vmul.f32 %v364_v14, %v1577_v1  ;;  %v445_v32 = vadd.f32 1.0, %v972_v19  ;;  %983 = vtanh.f32 %v417_v23  ;;  %v424_v33 = vmul.f32 0.7978846, %v408_v24 }
 0x221   :  { %v976_v34 = vpop.eup %975  ;;  %v379_v35 = vmul.f32 %v363_v3, %v1566_v53  ;;  %985 = vtanh.f32 %v419_v63  ;;  %v405_v36 = vadd.f32 %v389_v29, %v1537_v25  ;;  %v391_v37 = vmul.f32 %v375_v5, %v1547_v30 }
 0x222   :  { %v446_v40 = vadd.f32 1.0, %v976_v34  ;;  %v447_v61 = vadd.f32 1.0, %v974_v57  ;;  %987 = vtanh.f32 %v422_v4  ;;  %v394_v41 = vmul.f32 %v378_v56, %v1569_v54 }
 0x223   :  { %v978_v39 = vpop.eup %977  ;;  %989 = vtanh.f32 %v424_v33  ;;  %v421_v43 = vmul.f32 0.7978846, %v405_v36  ;;  %v407_v44 = vadd.f32 %v391_v37, %v1547_v30  ;;  %v461_v47 = vmul.f32 %v445_v32, %v1552_v38 }
 0x224   :  { %v448_v42 = vadd.f32 1.0, %v978_v39  ;;  %v462_v45 = vmul.f32 %v446_v40, %v334_v8  ;;  %v410_v52 = vadd.f32 %v394_v41, %v1569_v54  ;;  %v396_v58 = vmul.f32 %v380_v31, %v1577_v1 }
 0x225   :  { %991 = vtanh.f32 %v421_v43  ;;  %v423_v0 = vmul.f32 0.7978846, %v407_v44  ;;  %v393_v48 = vmul.f32 %v377_v20, %v1562_v46  ;;  %v463_v49 = vmul.f32 %v447_v61, %v1571_v59 }
 0x226   :  { %v464_v62 = vmul.f32 %v448_v42, %v336_v26  ;;  %612 = vmatprep.mubr.f32.mxu0 %v462_v45  ;;  %v426_v5 = vmul.f32 0.7978846, %v410_v52  ;;  %v412_v50 = vadd.f32 %v396_v58, %v1577_v1  ;;  %v395_v55 = vmul.f32 %v379_v35, %v1566_v53 }
 0x227   :  { %613 = vmatmul.mubr.f32.vlgmr.msra.gmra.mrb[8].mxu0 %v461_v47  ;;  %993 = vtanh.f32 %v423_v0  ;;  %v409_v38 = vadd.f32 %v393_v48, %v1562_v46  ;;  %v338_v51 = vmul.f32 0.5, %v1524_v13  ;;  %v340_v10 = vmul.f32 0.5, %v1527_v16 }
 0x228   :  { %697 = vmatprep.mubr.f32.mxu1 %v464_v62  ;;  %v980_v2 = vpop.eup %979  ;;  %995 = vtanh.f32 %v426_v5  ;;  %v428_v3 = vmul.f32 0.7978846, %v412_v50  ;;  %v411_v6 = vadd.f32 %v395_v55, %v1566_v53  ;;  %v337_v18 = vmul.f32 0.5, %v1521_v12 }
 0x229   :  { %698 = vmatmul.mubr.f32.vlgmr.msra.gmra.mrb[8].mxu1 %v463_v49  ;;  %v982_v7 = vpop.eup %981  ;;  %v450_v59 = vadd.f32 1.0, %v980_v2  ;;  %v425_v8 = vmul.f32 0.7978846, %v409_v38  ;;  %v339_v23 = vmul.f32 0.5, %v1531_v22  ;;  %v342_v16 = vmul.f32 0.5, %v1541_v27 }
 0x22a   :  { %v984_v9 = vpop.eup %983  ;;  %v452_v11 = vadd.f32 1.0, %v982_v7  ;;  %997 = vtanh.f32 %v428_v3  ;;  %v427_v14 = vmul.f32 0.7978846, %v411_v6  ;;  %v344_v57 = vmul.f32 0.5, %v1544_v28 }
 0x22b   :  { %v986_v15 = vpop.eup %985  ;;  %v466_v17 = vmul.f32 %v450_v59, %v338_v51  ;;  %v449_v19 = vadd.f32 1.0, %v984_v9  ;;  %999 = vtanh.f32 %v425_v8  ;;  %v341_v22 = vmul.f32 0.5, %v1537_v25 }
 0x22c   :  { %v988_v20 = vpop.eup %987  ;;  %v468_v21 = vmul.f32 %v452_v11, %v340_v10  ;;  %v451_v60 = vadd.f32 1.0, %v986_v15  ;;  %1001 = vtanh.f32 %v427_v14  ;;  %v343_v27 = vmul.f32 0.5, %v1547_v30  ;;  %v1004_v15 = vld [vmem:[%s1655_s0 + $0x8] sm:$0xff] }
 0x22d   :  { %v990_v13 = vpop.eup %989  ;;  %617 = vmatprep.mubr.f32.mxu0 %v466_v17  ;;  %v465_v56 = vmul.f32 %v449_v19, %v337_v18  ;;  %v454_v63 = vadd.f32 1.0, %v988_v20  ;;  %v346_v36 = vmul.f32 0.5, %v1569_v54  ;;  %v348_v41 = vmul.f32 0.5, %v1577_v1  ;;  %v742_v1 = vld [vmem:[%s1659_s4] ss:$0 sm:$0xff] }
 0x22e   :  { %702 = vmatprep.mubr.f32.mxu1 %v468_v21  ;;  %v467_v24 = vmul.f32 %v451_v60, %v339_v23  ;;  %v456_v26 = vadd.f32 1.0, %v990_v13  ;;  %v345_v43 = vmul.f32 0.5, %v1562_v46  ;;  %v347_v30 = vmul.f32 0.5, %v1566_v53  ;;  %v1003_v53 = vld [vmem:[%s1655_s0] sm:$0xff] }
 0x22f   :  { %v992_v12 = vpop.eup %991  ;;  %618 = vmatmul.mubr.f32.gmra.mrb[10].mxu0 %v465_v56  ;;  %v470_v4 = vmul.f32 %v454_v63, %v342_v16  ;;  %v1005_v56 = vld [vmem:[%s1655_s0 + $0x10] sm:$0xff] }
 0x230   :  { %703 = vmatmul.mubr.f32.gmra.mrb[10].mxu1 %v467_v24  ;;  %v472_v29 = vmul.f32 %v456_v26, %v344_v57  ;;  %v453_v31 = vadd.f32 1.0, %v992_v12 }
 0x231   :  { %v994_v32 = vpop.eup %993  ;;  %622 = vmatprep.mubr.f32.mxu0 %v470_v4  ;;  %v1006_v4 = vld [vmem:[%s1655_s0 + $0x18] sm:$0xff] }
 0x232   :  { %v996_v33 = vpop.eup %995  ;;  %707 = vmatprep.mubr.f32.mxu1 %v472_v29  ;;  %v469_v34 = vmul.f32 %v453_v31, %v341_v22  ;;  %v455_v35 = vadd.f32 1.0, %v994_v32 }
 0x233   :  { %v458_v28 = vadd.f32 1.0, %v996_v33 }
 0x234   :  { %v998_v37 = vpop.eup %997  ;;  %623 = vmatmul.mubr.f32.gmra.mrb[12].mxu0 %v469_v34  ;;  %v471_v39 = vmul.f32 %v455_v35, %v343_v27 }
 0x235   :  { %v1000_v40 = vpop.eup %999  ;;  %v474_v61 = vmul.f32 %v458_v28, %v346_v36  ;;  %v460_v25 = vadd.f32 1.0, %v998_v37 }
 0x236   :  { %v1002_v42 = vpop.eup %1001  ;;  %708 = vmatmul.mubr.f32.gmra.mrb[12].mxu1 %v471_v39  ;;  %v457_v44 = vadd.f32 1.0, %v1000_v40 }
 0x237   :  { %627 = vmatprep.mubr.f32.mxu0 %v474_v61  ;;  %v476_v45 = vmul.f32 %v460_v25, %v348_v41  ;;  %v459_v47 = vadd.f32 1.0, %v1002_v42 }
 0x238   :  { %v473_v54 = vmul.f32 %v457_v44, %v345_v43 }
 0x239   :  { %712 = vmatprep.mubr.f32.mxu1 %v476_v45  ;;  %v475_v52 = vmul.f32 %v459_v47, %v347_v30 }
 0x23a   :  { %628 = vmatmul.mubr.f32.gmra.mrb[14].mxu0 %v473_v54 }
 0x23b   :  { %713 = vmatmul.mubr.f32.gmra.mrb[14].mxu1 %v475_v52 }
 0x2fa   :  { %v775_v58 = vpop.f32.mrb[8].mxu0 }
 0x2fb   :  { %v776_v0 = vpop.f32.mrb[9].mxu0 }
 0x2fc   :  { %v819_v62 = vpop.f32.mrb[8].mxu1  ;;  %v777_v48 = vadd.f32 %v776_v0, %v775_v58 }
 0x2fd   :  { %v820_v46 = vpop.f32.mrb[9].mxu1 }
 0x2fe   :  { %v821_v49 = vadd.f32 %v820_v46, %v819_v62  ;;  %v615_v5 = vadd.f32 %v777_v48, %v742_v1 }
 0x300   :  { %v700_v50 = vadd.f32 %v821_v49, %v615_v5 }
 0x302   :  { %v718_v55 = vadd.f32 %v1003_v53, %v700_v50  ;;  %v778_v38 = vpop.f32.mrb[10].mxu0 }
 0x303   :  { %v822_v2 = vpop.f32.mrb[10].mxu1  ;;  %v779_v3 = vpop.f32.mrb[11].mxu0 }
 0x304   :  { %722 = vst [vmem:[#allocation2] sm:$0xff] %v718_v55  ;;  %v780_v6 = vadd.f32 %v779_v3, %v778_v38  ;;  %v823_v7 = vpop.f32.mrb[11].mxu1 }
 0x305   :  { %v824_v51 = vadd.f32 %v823_v7, %v822_v2 }
 0x306   :  { %v620_v59 = vadd.f32 %v780_v6, %v742_v1 }
 0x307   :  { %v781_v8 = vpop.f32.mrb[12].mxu0 }
 0x308   :  { %v705_v9 = vadd.f32 %v824_v51, %v620_v59  ;;  %v782_v10 = vpop.f32.mrb[13].mxu0 }
 0x309   :  { %v825_v11 = vpop.f32.mrb[12].mxu1  ;;  %v783_v14 = vadd.f32 %v782_v10, %v781_v8 }
 0x30a   :  { %v719_v17 = vadd.f32 %v1004_v15, %v705_v9  ;;  %v826_v18 = vpop.f32.mrb[13].mxu1 }
 0x30b   :  { %v625_v19 = vadd.f32 %v783_v14, %v742_v1  ;;  %v827_v20 = vadd.f32 %v826_v18, %v825_v11 }
 0x30c   :  { %723 = vst [vmem:[#allocation2 + $0x8] sm:$0xff] %v719_v17 }
 0x30d   :  { %v710_v21 = vadd.f32 %v827_v20, %v625_v19  ;;  %v784_v23 = vpop.f32.mrb[14].mxu0 }
 0x30e   :  { %v828_v60 = vpop.f32.mrb[14].mxu1  ;;  %v785_v13 = vpop.f32.mrb[15].mxu0 }
 0x30f   :  { %v720_v16 = vadd.f32 %v1005_v56, %v710_v21  ;;  %v786_v63 = vadd.f32 %v785_v13, %v784_v23  ;;  %v829_v24 = vpop.f32.mrb[15].mxu1 }
 0x310   :  { %v830_v57 = vadd.f32 %v829_v24, %v828_v60 }
 0x311   :  { %724 = vst [vmem:[#allocation2 + $0x10] sm:$0xff] %v720_v16  ;;  %v630_v26 = vadd.f32 %v786_v63, %v742_v1 }
 0x313   :  { %v715_v12 = vadd.f32 %v830_v57, %v630_v26 }
 0x315   :  { %v721_v29 = vadd.f32 %v1006_v4, %v715_v12 }
 0x317   :  { %725 = vst [vmem:[#allocation2 + $0x18] sm:$0xff] %v721_v29 }
 0x318   :  { %1018 = shalt.err (!%p1015_p4)
}
 0x319   :  { %s1019_s15 = scalar_lea.hbm %s1660_s5, 512 }
 0x31a   :  { %p1020_p5 = scmp.ne.s32.totalorder %s1660_s5, %s1019_s15  ;;  %p1023_p6 = scmp.lt.u32.totalorder %s1019_s15, %s1660_s5 }
 0x31c   :  { %p1025_p7 = pnand %p1023_p6, %p1020_p5 }
 0x31e   :  { %1028 = shalt.err (!%p1025_p7)
}
 0x31f   :  { %s1033_s19 = smov 128   ;;  %s1034_s20 = smov 8  }
 0x320   :  { %737 = dma.vmem_to_hbm [thread:$0]  %s732_s1, 512, %s1660_s5, [#allocation3], %s1033_s19, %s1033_s19, %s1034_s20  }
 0x321   :  { %1029 = dma.done.wait [#allocation3], 512  }
 0x322   :  { %1030 = vsyncadd [#allocation3], 4294966784 }
 0x323   :  { %741 = vsyncpa [#allocation3], 1 }

</bundles_post_ra>
